<compile_context>
chip_gen: v6e
topology: v6e:2x2x1
jax: 0.10.0
libtpu: 0.0.40
codegen_flags: <defaults>
</compile_context>

<pallas_src>
import functools

import jax
import jax.numpy as jnp
from jax.experimental import pallas as pl
from jax.experimental.pallas import tpu as pltpu

LANE = 128


def _round_up(n, m):
    return ((n + m - 1) // m) * m


def _lstm_kernel(xp_ref, w_hh_ref, w_fc_ref, b_fc_ref, out_ref):
    # xp_ref:   (T, B, 4*Hp)  precomputed x_t @ W_ih^T + b, gate order [i,f,o,g]
    # w_hh_ref: (Hp, 4*Hp)    W_hh^T, per-gate lane-padded, gate order [i,f,o,g]
    # w_fc_ref: (Hp, Op)      FC weight^T, rows >= H and cols >= O are zero
    # b_fc_ref: (1, Op)
    # out_ref:  (B, Op)
    T, B, _ = xp_ref.shape
    Hp = w_fc_ref.shape[0]
    wd = w_hh_ref.dtype

    def step(t, carry):
        h, c = carry
        # Only serially-dependent matmul: (B, Hp) x (Hp, 4*Hp), K = 128.
        # W_hh is read from VMEM each step (not held live across the unrolled
        # loop -> no vreg spills); the x contribution and bias are already in
        # xp_ref, off the critical path.
        gates = xp_ref[t] + jnp.dot(h.astype(wd), w_hh_ref[...],
                                    preferred_element_type=jnp.float32)
        # Gate packing [i, f, o, g]: one sigmoid over 3 gates, one tanh.
        sig = jax.nn.sigmoid(gates[:, :3 * Hp])
        i_g = sig[:, 0 * Hp:1 * Hp]
        f_g = sig[:, 1 * Hp:2 * Hp]
        o_g = sig[:, 2 * Hp:3 * Hp]
        g_g = jnp.tanh(gates[:, 3 * Hp:])
        # Padded lanes have zero weights/bias => i=f=o=0.5, g=0; with c0 = 0
        # those lanes stay exactly 0 forever, so no masking is needed.
        c_new = f_g * c + i_g * g_g
        h_new = o_g * jnp.tanh(c_new)
        return (h_new, c_new)

    h0 = jnp.zeros((B, Hp), jnp.float32)
    c0 = jnp.zeros((B, Hp), jnp.float32)
    h_last, _ = jax.lax.fori_loop(0, T, step, (h0, c0), unroll=True)

    out_ref[...] = (jnp.dot(h_last.astype(wd), w_fc_ref[...],
                            preferred_element_type=jnp.float32)
                    + b_fc_ref[...]).astype(out_ref.dtype)


def pack_lstm_params(params, input_size, *, weights_dtype=jnp.float32):
    """One-time weight packing (run at load time, NOT per forward call).

    Gate order is permuted from PyTorch's [i, f, g, o] to [i, f, o, g] so the
    three sigmoid gates are contiguous. Each gate occupies a 128-lane block.
    """
    H = params["w_hh"].shape[1]
    O = params["w_fc"].shape[0]
    Hp = _round_up(H, LANE)
    Op = _round_up(O, LANE)
    G = 4 * Hp
    gate_perm = (0, 1, 3, 2)  # packed slot -> torch gate chunk (i, f, o, g)

    w_ih = params["w_ih"].astype(jnp.float32)                 # (4H, D)
    w_hh = params["w_hh"].astype(jnp.float32)                 # (4H, H)
    bias = (params["b_ih"] + params["b_hh"]).astype(jnp.float32)  # (4H,)

    w_ih_pad = jnp.zeros((input_size, G), jnp.float32)
    w_hh_pad = jnp.zeros((Hp, G), jnp.float32)
    b_pad = jnp.zeros((1, G), jnp.float32)
    for slot, tg in enumerate(gate_perm):
        w_ih_pad = w_ih_pad.at[:, slot * Hp:slot * Hp + H].set(
            w_ih[tg * H:(tg + 1) * H, :].T)
        w_hh_pad = w_hh_pad.at[:H, slot * Hp:slot * Hp + H].set(
            w_hh[tg * H:(tg + 1) * H, :].T)
        b_pad = b_pad.at[0, slot * Hp:slot * Hp + H].set(
            bias[tg * H:(tg + 1) * H])

    w_fc_pad = jnp.zeros((Hp, Op), jnp.float32).at[:H, :O].set(
        params["w_fc"].astype(jnp.float32).T)
    b_fc_pad = jnp.zeros((1, Op), jnp.float32).at[0, :O].set(
        params["b_fc"].astype(jnp.float32))

    return {
        "w_ih": w_ih_pad.astype(weights_dtype),   # (D, 4*Hp)
        "w_hh": w_hh_pad.astype(weights_dtype),   # (Hp, 4*Hp)
        "b": b_pad,                                # (1, 4*Hp) f32
        "w_fc": w_fc_pad.astype(weights_dtype),   # (Hp, Op)
        "b_fc": b_fc_pad,                          # (1, Op)  f32
    }


@functools.partial(jax.jit, static_argnames=("out_features",))
def lstm_model_forward(x, packed, *, out_features):
    """x: (B, T, D_in) batch-first, like the PyTorch module."""
    B, T, D = x.shape
    w_ih, w_hh, b = packed["w_ih"], packed["w_hh"], packed["b"]
    w_fc, b_fc = packed["w_fc"], packed["b_fc"]
    Hp, Op = w_fc.shape

    # Batched input projection, off the serial recurrence: one
    # (T*B, D) x (D, 4*Hp) GEMM (much better MXU fill than M=2 per step).
    x_tm = jnp.transpose(x.astype(w_ih.dtype), (1, 0, 2))        # (T, B, D)
    x_proj = jnp.dot(x_tm, w_ih,
                     precision=jax.lax.Precision.HIGHEST,
                     preferred_element_type=jnp.float32) + b     # (T, B, 4*Hp)

    vmem = pltpu.MemorySpace.VMEM
    out_padded = pl.pallas_call(
        _lstm_kernel,
        out_shape=jax.ShapeDtypeStruct((B, Op), jnp.float32),
        # No grid: single invocation, everything resident in VMEM (<0.5 MiB).
        in_specs=[pl.BlockSpec(memory_space=vmem)] * 4,
        out_specs=pl.BlockSpec(memory_space=vmem),
    )(x_proj, w_hh, w_fc, b_fc)
    return out_padded[:, :out_features]


def _reference_forward(x, params):
    """Pure-JAX reference matching torch.nn.LSTM gate conventions."""
    w_ih, w_hh = params["w_ih"], params["w_hh"]
    b = params["b_ih"] + params["b_hh"]
    B, T, _ = x.shape
    H = w_hh.shape[1]

    def step(carry, x_t):
        h, c = carry
        gates = x_t @ w_ih.T + h @ w_hh.T + b
        i = jax.nn.sigmoid(gates[:, 0 * H:1 * H])
        f = jax.nn.sigmoid(gates[:, 1 * H:2 * H])
        g = jnp.tanh(gates[:, 2 * H:3 * H])
        o = jax.nn.sigmoid(gates[:, 3 * H:4 * H])
        c_new = f * c + i * g
        h_new = o * jnp.tanh(c_new)
        return (h_new, c_new), None

    h0 = jnp.zeros((B, H), jnp.float32)
    c0 = jnp.zeros((B, H), jnp.float32)
    (h_last, _), _ = jax.lax.scan(step, (h0, c0), jnp.transpose(x, (1, 0, 2)))
    return h_last @ params["w_fc"].T + params["b_fc"]


def init_params(key, input_size, hidden_size, output_size):
    """Deterministic init mimicking PyTorch's U(-1/sqrt(H), 1/sqrt(H))."""
    ks = jax.random.split(key, 6)
    k = 1.0 / jnp.sqrt(hidden_size)
    u = lambda kk, shape, s: jax.random.uniform(kk, shape, jnp.float32, -s, s)
    return {
        "w_ih": u(ks[0], (4 * hidden_size, input_size), k),
        "w_hh": u(ks[1], (4 * hidden_size, hidden_size), k),
        "b_ih": u(ks[2], (4 * hidden_size,), k),
        "b_hh": u(ks[3], (4 * hidden_size,), k),
        "w_fc": u(ks[4], (output_size, hidden_size), k),
        "b_fc": u(ks[5], (output_size,), k),
    }


if __name__ == "__main__":
    # Shapes implied by the module: hidden is hardcoded to 50 in forward().
    B, T, INPUT_SIZE, HIDDEN_SIZE, OUTPUT_SIZE = 2, 8, 16, 50, 8

    key = jax.random.PRNGKey(0)
    k_x, k_p = jax.random.split(key)
    x = jax.random.normal(k_x, (B, T, INPUT_SIZE), dtype=jnp.float32)
    params = init_params(k_p, INPUT_SIZE, HIDDEN_SIZE, OUTPUT_SIZE)

    # One-time packing (load time), jitted per-call forward.
    packed = pack_lstm_params(params, INPUT_SIZE)  # weights_dtype=jnp.bfloat16 on v6e/v7x

    out = jax.block_until_ready(
        lstm_model_forward(x, packed, out_features=OUTPUT_SIZE))
    ref = jax.block_until_ready(_reference_forward(x, params))

    assert out.shape == (B, OUTPUT_SIZE)
    assert jnp.allclose(out, ref, atol=1e-5, rtol=1e-5), "mismatch vs reference"
    print("KERNEL_OK")
</pallas_src>

<mosaic_0001>
module attributes {stable_mosaic.version = 11 : i64} {
  func.func @_lstm_kernel(%arg0: memref<8x2x512xf32, #tpu.memory_space<vmem>>, %arg1: memref<128x512xf32, #tpu.memory_space<vmem>>, %arg2: memref<128x128xf32, #tpu.memory_space<vmem>>, %arg3: memref<1x128xf32, #tpu.memory_space<vmem>>, %arg4: memref<2x128xf32, #tpu.memory_space<vmem>>) attributes {dimension_semantics = [], scalar_prefetch = 0 : i64, scratch_operands = 0 : i64, tpu.core_type = #tpu.core_type<tc>} {
    %cst = arith.constant 0.000000e+00 : f32
    %0 = vector.broadcast %cst : f32 to vector<2x128xf32>
    %cst_0 = arith.constant 0.000000e+00 : f32
    %1 = vector.broadcast %cst_0 : f32 to vector<2x128xf32>
    %c0_i32 = arith.constant 0 : i32
    %2 = arith.index_cast %c0_i32 : i32 to index
    %c0 = arith.constant 0 : index
    %c0_1 = arith.constant 0 : index
    %3 = vector.load %arg0[%2, %c0, %c0_1] : memref<8x2x512xf32, #tpu.memory_space<vmem>>, vector<1x2x512xf32>
    %4 = vector.shape_cast %3 : vector<1x2x512xf32> to vector<2x512xf32>
    %c0_2 = arith.constant 0 : index
    %c0_3 = arith.constant 0 : index
    %5 = vector.load %arg1[%c0_2, %c0_3] : memref<128x512xf32, #tpu.memory_space<vmem>>, vector<128x512xf32>
    %cst_4 = arith.constant dense<0.000000e+00> : vector<2x512xf32>
    %6 = tpu.matmul %0, %5, %cst_4 {dimension_numbers = #tpu.dot_dimension_numbers<[1], [0], [0], [1], [0, 0, 1, 1], [], []>} : vector<2x128xf32>, vector<128x512xf32>, vector<2x512xf32> -> vector<2x512xf32>
    %7 = arith.addf %4, %6 : vector<2x512xf32>
    %8 = vector.extract_strided_slice %7 {offsets = [0, 0], sizes = [2, 384], strides = [1, 1]} : vector<2x512xf32> to vector<2x384xf32>
    %9 = arith.negf %8 : vector<2x384xf32>
    %10 = math.exp %9 : vector<2x384xf32>
    %cst_5 = arith.constant 1.000000e+00 : f32
    %11 = vector.broadcast %cst_5 : f32 to vector<2x384xf32>
    %12 = arith.addf %11, %10 : vector<2x384xf32>
    %13 = arith.divf %11, %12 : vector<2x384xf32>
    %14 = vector.extract_strided_slice %13 {offsets = [0, 0], sizes = [2, 128], strides = [1, 1]} : vector<2x384xf32> to vector<2x128xf32>
    %15 = vector.extract_strided_slice %13 {offsets = [0, 128], sizes = [2, 128], strides = [1, 1]} : vector<2x384xf32> to vector<2x128xf32>
    %16 = vector.extract_strided_slice %13 {offsets = [0, 256], sizes = [2, 128], strides = [1, 1]} : vector<2x384xf32> to vector<2x128xf32>
    %17 = vector.extract_strided_slice %7 {offsets = [0, 384], sizes = [2, 128], strides = [1, 1]} : vector<2x512xf32> to vector<2x128xf32>
    %18 = math.tanh %17 : vector<2x128xf32>
    %19 = arith.mulf %15, %1 : vector<2x128xf32>
    %20 = arith.mulf %14, %18 : vector<2x128xf32>
    %21 = arith.addf %19, %20 : vector<2x128xf32>
    %22 = math.tanh %21 : vector<2x128xf32>
    %23 = arith.mulf %16, %22 : vector<2x128xf32>
    %c1_i32 = arith.constant 1 : i32
    %24 = arith.index_cast %c1_i32 : i32 to index
    %c0_6 = arith.constant 0 : index
    %c0_7 = arith.constant 0 : index
    %25 = vector.load %arg0[%24, %c0_6, %c0_7] : memref<8x2x512xf32, #tpu.memory_space<vmem>>, vector<1x2x512xf32>
    %26 = vector.shape_cast %25 : vector<1x2x512xf32> to vector<2x512xf32>
    %c0_8 = arith.constant 0 : index
    %c0_9 = arith.constant 0 : index
    %27 = vector.load %arg1[%c0_8, %c0_9] : memref<128x512xf32, #tpu.memory_space<vmem>>, vector<128x512xf32>
    %cst_10 = arith.constant dense<0.000000e+00> : vector<2x512xf32>
    %28 = tpu.matmul %23, %27, %cst_10 {dimension_numbers = #tpu.dot_dimension_numbers<[1], [0], [0], [1], [0, 0, 1, 1], [], []>} : vector<2x128xf32>, vector<128x512xf32>, vector<2x512xf32> -> vector<2x512xf32>
    %29 = arith.addf %26, %28 : vector<2x512xf32>
    %30 = vector.extract_strided_slice %29 {offsets = [0, 0], sizes = [2, 384], strides = [1, 1]} : vector<2x512xf32> to vector<2x384xf32>
    %31 = arith.negf %30 : vector<2x384xf32>
    %32 = math.exp %31 : vector<2x384xf32>
    %cst_11 = arith.constant 1.000000e+00 : f32
    %33 = vector.broadcast %cst_11 : f32 to vector<2x384xf32>
    %34 = arith.addf %33, %32 : vector<2x384xf32>
    %35 = arith.divf %33, %34 : vector<2x384xf32>
    %36 = vector.extract_strided_slice %35 {offsets = [0, 0], sizes = [2, 128], strides = [1, 1]} : vector<2x384xf32> to vector<2x128xf32>
    %37 = vector.extract_strided_slice %35 {offsets = [0, 128], sizes = [2, 128], strides = [1, 1]} : vector<2x384xf32> to vector<2x128xf32>
    %38 = vector.extract_strided_slice %35 {offsets = [0, 256], sizes = [2, 128], strides = [1, 1]} : vector<2x384xf32> to vector<2x128xf32>
    %39 = vector.extract_strided_slice %29 {offsets = [0, 384], sizes = [2, 128], strides = [1, 1]} : vector<2x512xf32> to vector<2x128xf32>
    %40 = math.tanh %39 : vector<2x128xf32>
    %41 = arith.mulf %37, %21 : vector<2x128xf32>
    %42 = arith.mulf %36, %40 : vector<2x128xf32>
    %43 = arith.addf %41, %42 : vector<2x128xf32>
    %44 = math.tanh %43 : vector<2x128xf32>
    %45 = arith.mulf %38, %44 : vector<2x128xf32>
    %c2_i32 = arith.constant 2 : i32
    %46 = arith.index_cast %c2_i32 : i32 to index
    %c0_12 = arith.constant 0 : index
    %c0_13 = arith.constant 0 : index
    %47 = vector.load %arg0[%46, %c0_12, %c0_13] : memref<8x2x512xf32, #tpu.memory_space<vmem>>, vector<1x2x512xf32>
    %48 = vector.shape_cast %47 : vector<1x2x512xf32> to vector<2x512xf32>
    %c0_14 = arith.constant 0 : index
    %c0_15 = arith.constant 0 : index
    %49 = vector.load %arg1[%c0_14, %c0_15] : memref<128x512xf32, #tpu.memory_space<vmem>>, vector<128x512xf32>
    %cst_16 = arith.constant dense<0.000000e+00> : vector<2x512xf32>
    %50 = tpu.matmul %45, %49, %cst_16 {dimension_numbers = #tpu.dot_dimension_numbers<[1], [0], [0], [1], [0, 0, 1, 1], [], []>} : vector<2x128xf32>, vector<128x512xf32>, vector<2x512xf32> -> vector<2x512xf32>
    %51 = arith.addf %48, %50 : vector<2x512xf32>
    %52 = vector.extract_strided_slice %51 {offsets = [0, 0], sizes = [2, 384], strides = [1, 1]} : vector<2x512xf32> to vector<2x384xf32>
    %53 = arith.negf %52 : vector<2x384xf32>
    %54 = math.exp %53 : vector<2x384xf32>
    %cst_17 = arith.constant 1.000000e+00 : f32
    %55 = vector.broadcast %cst_17 : f32 to vector<2x384xf32>
    %56 = arith.addf %55, %54 : vector<2x384xf32>
    %57 = arith.divf %55, %56 : vector<2x384xf32>
    %58 = vector.extract_strided_slice %57 {offsets = [0, 0], sizes = [2, 128], strides = [1, 1]} : vector<2x384xf32> to vector<2x128xf32>
    %59 = vector.extract_strided_slice %57 {offsets = [0, 128], sizes = [2, 128], strides = [1, 1]} : vector<2x384xf32> to vector<2x128xf32>
    %60 = vector.extract_strided_slice %57 {offsets = [0, 256], sizes = [2, 128], strides = [1, 1]} : vector<2x384xf32> to vector<2x128xf32>
    %61 = vector.extract_strided_slice %51 {offsets = [0, 384], sizes = [2, 128], strides = [1, 1]} : vector<2x512xf32> to vector<2x128xf32>
    %62 = math.tanh %61 : vector<2x128xf32>
    %63 = arith.mulf %59, %43 : vector<2x128xf32>
    %64 = arith.mulf %58, %62 : vector<2x128xf32>
    %65 = arith.addf %63, %64 : vector<2x128xf32>
    %66 = math.tanh %65 : vector<2x128xf32>
    %67 = arith.mulf %60, %66 : vector<2x128xf32>
    %c3_i32 = arith.constant 3 : i32
    %68 = arith.index_cast %c3_i32 : i32 to index
    %c0_18 = arith.constant 0 : index
    %c0_19 = arith.constant 0 : index
    %69 = vector.load %arg0[%68, %c0_18, %c0_19] : memref<8x2x512xf32, #tpu.memory_space<vmem>>, vector<1x2x512xf32>
    %70 = vector.shape_cast %69 : vector<1x2x512xf32> to vector<2x512xf32>
    %c0_20 = arith.constant 0 : index
    %c0_21 = arith.constant 0 : index
    %71 = vector.load %arg1[%c0_20, %c0_21] : memref<128x512xf32, #tpu.memory_space<vmem>>, vector<128x512xf32>
    %cst_22 = arith.constant dense<0.000000e+00> : vector<2x512xf32>
    %72 = tpu.matmul %67, %71, %cst_22 {dimension_numbers = #tpu.dot_dimension_numbers<[1], [0], [0], [1], [0, 0, 1, 1], [], []>} : vector<2x128xf32>, vector<128x512xf32>, vector<2x512xf32> -> vector<2x512xf32>
    %73 = arith.addf %70, %72 : vector<2x512xf32>
    %74 = vector.extract_strided_slice %73 {offsets = [0, 0], sizes = [2, 384], strides = [1, 1]} : vector<2x512xf32> to vector<2x384xf32>
    %75 = arith.negf %74 : vector<2x384xf32>
    %76 = math.exp %75 : vector<2x384xf32>
    %cst_23 = arith.constant 1.000000e+00 : f32
    %77 = vector.broadcast %cst_23 : f32 to vector<2x384xf32>
    %78 = arith.addf %77, %76 : vector<2x384xf32>
    %79 = arith.divf %77, %78 : vector<2x384xf32>
    %80 = vector.extract_strided_slice %79 {offsets = [0, 0], sizes = [2, 128], strides = [1, 1]} : vector<2x384xf32> to vector<2x128xf32>
    %81 = vector.extract_strided_slice %79 {offsets = [0, 128], sizes = [2, 128], strides = [1, 1]} : vector<2x384xf32> to vector<2x128xf32>
    %82 = vector.extract_strided_slice %79 {offsets = [0, 256], sizes = [2, 128], strides = [1, 1]} : vector<2x384xf32> to vector<2x128xf32>
    %83 = vector.extract_strided_slice %73 {offsets = [0, 384], sizes = [2, 128], strides = [1, 1]} : vector<2x512xf32> to vector<2x128xf32>
    %84 = math.tanh %83 : vector<2x128xf32>
    %85 = arith.mulf %81, %65 : vector<2x128xf32>
    %86 = arith.mulf %80, %84 : vector<2x128xf32>
    %87 = arith.addf %85, %86 : vector<2x128xf32>
    %88 = math.tanh %87 : vector<2x128xf32>
    %89 = arith.mulf %82, %88 : vector<2x128xf32>
    %c4_i32 = arith.constant 4 : i32
    %90 = arith.index_cast %c4_i32 : i32 to index
    %c0_24 = arith.constant 0 : index
    %c0_25 = arith.constant 0 : index
    %91 = vector.load %arg0[%90, %c0_24, %c0_25] : memref<8x2x512xf32, #tpu.memory_space<vmem>>, vector<1x2x512xf32>
    %92 = vector.shape_cast %91 : vector<1x2x512xf32> to vector<2x512xf32>
    %c0_26 = arith.constant 0 : index
    %c0_27 = arith.constant 0 : index
    %93 = vector.load %arg1[%c0_26, %c0_27] : memref<128x512xf32, #tpu.memory_space<vmem>>, vector<128x512xf32>
    %cst_28 = arith.constant dense<0.000000e+00> : vector<2x512xf32>
    %94 = tpu.matmul %89, %93, %cst_28 {dimension_numbers = #tpu.dot_dimension_numbers<[1], [0], [0], [1], [0, 0, 1, 1], [], []>} : vector<2x128xf32>, vector<128x512xf32>, vector<2x512xf32> -> vector<2x512xf32>
    %95 = arith.addf %92, %94 : vector<2x512xf32>
    %96 = vector.extract_strided_slice %95 {offsets = [0, 0], sizes = [2, 384], strides = [1, 1]} : vector<2x512xf32> to vector<2x384xf32>
    %97 = arith.negf %96 : vector<2x384xf32>
    %98 = math.exp %97 : vector<2x384xf32>
    %cst_29 = arith.constant 1.000000e+00 : f32
    %99 = vector.broadcast %cst_29 : f32 to vector<2x384xf32>
    %100 = arith.addf %99, %98 : vector<2x384xf32>
    %101 = arith.divf %99, %100 : vector<2x384xf32>
    %102 = vector.extract_strided_slice %101 {offsets = [0, 0], sizes = [2, 128], strides = [1, 1]} : vector<2x384xf32> to vector<2x128xf32>
    %103 = vector.extract_strided_slice %101 {offsets = [0, 128], sizes = [2, 128], strides = [1, 1]} : vector<2x384xf32> to vector<2x128xf32>
    %104 = vector.extract_strided_slice %101 {offsets = [0, 256], sizes = [2, 128], strides = [1, 1]} : vector<2x384xf32> to vector<2x128xf32>
    %105 = vector.extract_strided_slice %95 {offsets = [0, 384], sizes = [2, 128], strides = [1, 1]} : vector<2x512xf32> to vector<2x128xf32>
    %106 = math.tanh %105 : vector<2x128xf32>
    %107 = arith.mulf %103, %87 : vector<2x128xf32>
    %108 = arith.mulf %102, %106 : vector<2x128xf32>
    %109 = arith.addf %107, %108 : vector<2x128xf32>
    %110 = math.tanh %109 : vector<2x128xf32>
    %111 = arith.mulf %104, %110 : vector<2x128xf32>
    %c5_i32 = arith.constant 5 : i32
    %112 = arith.index_cast %c5_i32 : i32 to index
    %c0_30 = arith.constant 0 : index
    %c0_31 = arith.constant 0 : index
    %113 = vector.load %arg0[%112, %c0_30, %c0_31] : memref<8x2x512xf32, #tpu.memory_space<vmem>>, vector<1x2x512xf32>
    %114 = vector.shape_cast %113 : vector<1x2x512xf32> to vector<2x512xf32>
    %c0_32 = arith.constant 0 : index
    %c0_33 = arith.constant 0 : index
    %115 = vector.load %arg1[%c0_32, %c0_33] : memref<128x512xf32, #tpu.memory_space<vmem>>, vector<128x512xf32>
    %cst_34 = arith.constant dense<0.000000e+00> : vector<2x512xf32>
    %116 = tpu.matmul %111, %115, %cst_34 {dimension_numbers = #tpu.dot_dimension_numbers<[1], [0], [0], [1], [0, 0, 1, 1], [], []>} : vector<2x128xf32>, vector<128x512xf32>, vector<2x512xf32> -> vector<2x512xf32>
    %117 = arith.addf %114, %116 : vector<2x512xf32>
    %118 = vector.extract_strided_slice %117 {offsets = [0, 0], sizes = [2, 384], strides = [1, 1]} : vector<2x512xf32> to vector<2x384xf32>
    %119 = arith.negf %118 : vector<2x384xf32>
    %120 = math.exp %119 : vector<2x384xf32>
    %cst_35 = arith.constant 1.000000e+00 : f32
    %121 = vector.broadcast %cst_35 : f32 to vector<2x384xf32>
    %122 = arith.addf %121, %120 : vector<2x384xf32>
    %123 = arith.divf %121, %122 : vector<2x384xf32>
    %124 = vector.extract_strided_slice %123 {offsets = [0, 0], sizes = [2, 128], strides = [1, 1]} : vector<2x384xf32> to vector<2x128xf32>
    %125 = vector.extract_strided_slice %123 {offsets = [0, 128], sizes = [2, 128], strides = [1, 1]} : vector<2x384xf32> to vector<2x128xf32>
    %126 = vector.extract_strided_slice %123 {offsets = [0, 256], sizes = [2, 128], strides = [1, 1]} : vector<2x384xf32> to vector<2x128xf32>
    %127 = vector.extract_strided_slice %117 {offsets = [0, 384], sizes = [2, 128], strides = [1, 1]} : vector<2x512xf32> to vector<2x128xf32>
    %128 = math.tanh %127 : vector<2x128xf32>
    %129 = arith.mulf %125, %109 : vector<2x128xf32>
    %130 = arith.mulf %124, %128 : vector<2x128xf32>
    %131 = arith.addf %129, %130 : vector<2x128xf32>
    %132 = math.tanh %131 : vector<2x128xf32>
    %133 = arith.mulf %126, %132 : vector<2x128xf32>
    %c6_i32 = arith.constant 6 : i32
    %134 = arith.index_cast %c6_i32 : i32 to index
    %c0_36 = arith.constant 0 : index
    %c0_37 = arith.constant 0 : index
    %135 = vector.load %arg0[%134, %c0_36, %c0_37] : memref<8x2x512xf32, #tpu.memory_space<vmem>>, vector<1x2x512xf32>
    %136 = vector.shape_cast %135 : vector<1x2x512xf32> to vector<2x512xf32>
    %c0_38 = arith.constant 0 : index
    %c0_39 = arith.constant 0 : index
    %137 = vector.load %arg1[%c0_38, %c0_39] : memref<128x512xf32, #tpu.memory_space<vmem>>, vector<128x512xf32>
    %cst_40 = arith.constant dense<0.000000e+00> : vector<2x512xf32>
    %138 = tpu.matmul %133, %137, %cst_40 {dimension_numbers = #tpu.dot_dimension_numbers<[1], [0], [0], [1], [0, 0, 1, 1], [], []>} : vector<2x128xf32>, vector<128x512xf32>, vector<2x512xf32> -> vector<2x512xf32>
    %139 = arith.addf %136, %138 : vector<2x512xf32>
    %140 = vector.extract_strided_slice %139 {offsets = [0, 0], sizes = [2, 384], strides = [1, 1]} : vector<2x512xf32> to vector<2x384xf32>
    %141 = arith.negf %140 : vector<2x384xf32>
    %142 = math.exp %141 : vector<2x384xf32>
    %cst_41 = arith.constant 1.000000e+00 : f32
    %143 = vector.broadcast %cst_41 : f32 to vector<2x384xf32>
    %144 = arith.addf %143, %142 : vector<2x384xf32>
    %145 = arith.divf %143, %144 : vector<2x384xf32>
    %146 = vector.extract_strided_slice %145 {offsets = [0, 0], sizes = [2, 128], strides = [1, 1]} : vector<2x384xf32> to vector<2x128xf32>
    %147 = vector.extract_strided_slice %145 {offsets = [0, 128], sizes = [2, 128], strides = [1, 1]} : vector<2x384xf32> to vector<2x128xf32>
    %148 = vector.extract_strided_slice %145 {offsets = [0, 256], sizes = [2, 128], strides = [1, 1]} : vector<2x384xf32> to vector<2x128xf32>
    %149 = vector.extract_strided_slice %139 {offsets = [0, 384], sizes = [2, 128], strides = [1, 1]} : vector<2x512xf32> to vector<2x128xf32>
    %150 = math.tanh %149 : vector<2x128xf32>
    %151 = arith.mulf %147, %131 : vector<2x128xf32>
    %152 = arith.mulf %146, %150 : vector<2x128xf32>
    %153 = arith.addf %151, %152 : vector<2x128xf32>
    %154 = math.tanh %153 : vector<2x128xf32>
    %155 = arith.mulf %148, %154 : vector<2x128xf32>
    %c7_i32 = arith.constant 7 : i32
    %156 = arith.index_cast %c7_i32 : i32 to index
    %c0_42 = arith.constant 0 : index
    %c0_43 = arith.constant 0 : index
    %157 = vector.load %arg0[%156, %c0_42, %c0_43] : memref<8x2x512xf32, #tpu.memory_space<vmem>>, vector<1x2x512xf32>
    %158 = vector.shape_cast %157 : vector<1x2x512xf32> to vector<2x512xf32>
    %c0_44 = arith.constant 0 : index
    %c0_45 = arith.constant 0 : index
    %159 = vector.load %arg1[%c0_44, %c0_45] : memref<128x512xf32, #tpu.memory_space<vmem>>, vector<128x512xf32>
    %cst_46 = arith.constant dense<0.000000e+00> : vector<2x512xf32>
    %160 = tpu.matmul %155, %159, %cst_46 {dimension_numbers = #tpu.dot_dimension_numbers<[1], [0], [0], [1], [0, 0, 1, 1], [], []>} : vector<2x128xf32>, vector<128x512xf32>, vector<2x512xf32> -> vector<2x512xf32>
    %161 = arith.addf %158, %160 : vector<2x512xf32>
    %162 = vector.extract_strided_slice %161 {offsets = [0, 0], sizes = [2, 384], strides = [1, 1]} : vector<2x512xf32> to vector<2x384xf32>
    %163 = arith.negf %162 : vector<2x384xf32>
    %164 = math.exp %163 : vector<2x384xf32>
    %cst_47 = arith.constant 1.000000e+00 : f32
    %165 = vector.broadcast %cst_47 : f32 to vector<2x384xf32>
    %166 = arith.addf %165, %164 : vector<2x384xf32>
    %167 = arith.divf %165, %166 : vector<2x384xf32>
    %168 = vector.extract_strided_slice %167 {offsets = [0, 0], sizes = [2, 128], strides = [1, 1]} : vector<2x384xf32> to vector<2x128xf32>
    %169 = vector.extract_strided_slice %167 {offsets = [0, 128], sizes = [2, 128], strides = [1, 1]} : vector<2x384xf32> to vector<2x128xf32>
    %170 = vector.extract_strided_slice %167 {offsets = [0, 256], sizes = [2, 128], strides = [1, 1]} : vector<2x384xf32> to vector<2x128xf32>
    %171 = vector.extract_strided_slice %161 {offsets = [0, 384], sizes = [2, 128], strides = [1, 1]} : vector<2x512xf32> to vector<2x128xf32>
    %172 = math.tanh %171 : vector<2x128xf32>
    %173 = arith.mulf %169, %153 : vector<2x128xf32>
    %174 = arith.mulf %168, %172 : vector<2x128xf32>
    %175 = arith.addf %173, %174 : vector<2x128xf32>
    %176 = math.tanh %175 : vector<2x128xf32>
    %177 = arith.mulf %170, %176 : vector<2x128xf32>
    %c8_i32 = arith.constant 8 : i32
    %c0_48 = arith.constant 0 : index
    %c0_49 = arith.constant 0 : index
    %178 = vector.load %arg2[%c0_48, %c0_49] : memref<128x128xf32, #tpu.memory_space<vmem>>, vector<128x128xf32>
    %cst_50 = arith.constant dense<0.000000e+00> : vector<2x128xf32>
    %179 = tpu.matmul %177, %178, %cst_50 {dimension_numbers = #tpu.dot_dimension_numbers<[1], [0], [0], [1], [0, 0, 1, 1], [], []>} : vector<2x128xf32>, vector<128x128xf32>, vector<2x128xf32> -> vector<2x128xf32>
    %c0_51 = arith.constant 0 : index
    %c0_52 = arith.constant 0 : index
    %180 = vector.load %arg3[%c0_51, %c0_52] : memref<1x128xf32, #tpu.memory_space<vmem>>, vector<1x128xf32>
    %181 = vector.broadcast %180 : vector<1x128xf32> to vector<2x128xf32>
    %182 = arith.addf %179, %181 : vector<2x128xf32>
    %c0_53 = arith.constant 0 : index
    %c0_54 = arith.constant 0 : index
    %183 = vector.load %arg4[%c0_53, %c0_54] : memref<2x128xf32, #tpu.memory_space<vmem>>, vector<2x128xf32>
    tpu.vector_store %arg4[%c0_53, %c0_54], %182 {strides = array<i32>} : memref<2x128xf32, #tpu.memory_space<vmem>>, vector<2x128xf32>,
    return
  }
}

</mosaic_0001>

<bundles_post_ra>
// kernel: lstm_model_forward.1
= control target key start
LH: loop header
LB: loop body
LE: loop exit
PB: predicated region body
PF: predicated region fallthrough
CT: control target
= control target key end

     0   :  { %9 = vsyncpa [#allocation3], 0  ;;  %s2909_s0 = inlined_call_operand.vmem [shape: f32[8,2,512], index: 0, kind: input, shape index: {}]   ;;  %s2910_s1 = inlined_call_operand.hbm [shape: f32[128,512], index: 1, kind: input, shape index: {}]   ;;  %s2911_s2 = inlined_call_operand.vmem [shape: f32[128,128], index: 2, kind: input, shape index: {}]   ;;  %s2912_s3 = inlined_call_operand.vmem [shape: f32[1,128], index: 3, kind: input, shape index: {}]   ;;  %s2913_s4 = inlined_call_operand.hbm [shape: f32[2,128], index: 4, kind: output, shape index: {}]  }
   0x1   :  { %10 = vsyncpa [#allocation4], 0  ;;  %s1947_s15 = smov [#allocation2]  }
   0x2   :  { %s18_s16 = sshll.u32 %s1947_s15, 4  ;;  %s19_s16 = int_to_ptr.vmem [resolvable:$true] %s18_s16 }
   0x3   :  { %s1911_s17 = scalar_lea.vmem %s19_s16, 8192  ;;  %p1916_p1 = scmp.lt.s32.totalorder %s19_s16, %s19_s16 }
   0x4   :  { %p1912_p0 = scmp.ne.s32.totalorder %s19_s16, %s1911_s17  ;;  %p1917_p2 = scmp.lt.s32.totalorder %s1911_s17, %s1911_s17 }
   0x6   :  { %p1918_p3 = por %p1917_p2, %p1916_p1 }
   0x8   :  { %p1919_p4 = pnand %p1918_p3, %p1912_p0 }
   0xa   :  { %1922 = shalt.err (!%p1919_p4)
}
   0xb   :  { %s1948_s18 = smov 512   ;;  %s1949_s19 = smov 32  }
   0xc   :  { %24 = dma.hbm_to_vmem [thread:$0]  %s2910_s1, 8192, %s19_s16, [#allocation3], %s1948_s18, %s1948_s18, %s1949_s19  }
   0xd   :  { %1943 = dma.done.wait [#allocation3], 8192  }
   0xe   :  { %1944 = vsyncadd [#allocation3], 4294959104  ;;  %v2914_v0 = vmov 0.0   ;;  %v1984_v1 = vld [vmem:[#allocation2 + $0x1e8] sm:$0xff]  ;;  %v1986_v2 = vld [vmem:[#allocation2 + $0x1f8] sm:$0xff]  ;;  %vm1952_vm0 = vmmov 0  }
   0xf   :  { %161 = vmatprep.mubr.f32.mxu0 %v2914_v0  ;;  %232 = vmatprep.mubr.f32.mxu1 %v2914_v0  ;;  %2977 = vst [vmem:[#allocation8_spill] sm:$0xff] %v1984_v1  ;;  %2978 = vst [vmem:[#allocation9_spill] sm:$0xff] %v1986_v2  ;;  %v1988_v3 = vld [vmem:[#allocation2 + $0x1e0] sm:$0xff]  ;;  %v1992_v4 = vld [vmem:[#allocation2 + $0x1f0] sm:$0xff]  ;;  %s1953_s16 = smov [#allocation5]  }
  0x10   :  { %97 = vmatprep.subr.mxu0 %v1984_v1  ;;  %168 = vmatprep.subr.mxu1 %v1986_v2  ;;  %v1994_v5 = vld [vmem:[#allocation2 + $0x1c8] sm:$0xff]  ;;  %v1996_v6 = vld [vmem:[#allocation2 + $0x1d8] sm:$0xff]  ;;  %v2000_v7 = vld [vmem:[#allocation2 + $0x1c0] sm:$0xff]  ;;  %s1691_s17 = sshll.u32 %s1953_s16, 4  ;;  %s1692_s17 = int_to_ptr.vmem [resolvable:$true] %s1691_s17 }
  0x11   :  { %98 = vmatpush1.msra.mxu0 %v1988_v3  ;;  %169 = vmatpush1.msra.mxu1 %v1992_v4  ;;  %v2002_v8 = vld [vmem:[#allocation2 + $0x1d0] sm:$0xff]  ;;  %v2004_v9 = vld [vmem:[#allocation2 + $0x1a8] sm:$0xff]  ;;  %v2008_v10 = vld [vmem:[#allocation2 + $0x1b8] sm:$0xff]  ;;  %s1923_s18 = scalar_lea.vmem %s1692_s17, 32  ;;  %p1928_p6 = scmp.lt.s32.totalorder %s1692_s17, %s1692_s17 }
  0x12   :  { %99 = vmatprep.subr.mxu0 %v1994_v5  ;;  %170 = vmatprep.subr.mxu1 %v1996_v6  ;;  %v2010_v11 = vld [vmem:[#allocation2 + $0x1a0] sm:$0xff]  ;;  %v2012_v12 = vld [vmem:[#allocation2 + $0x1b0] sm:$0xff]  ;;  %v2016_v13 = vld [vmem:[#allocation2 + $0x188] sm:$0xff]  ;;  %p1924_p5 = scmp.ne.s32.totalorder %s1692_s17, %s1923_s18  ;;  %p1929_p7 = scmp.lt.s32.totalorder %s1923_s18, %s1923_s18 }
  0x13   :  { %100 = vmatpush1.msra.mxu0 %v2000_v7  ;;  %171 = vmatpush1.msra.mxu1 %v2002_v8  ;;  %v2018_v14 = vld [vmem:[#allocation2 + $0x198] sm:$0xff]  ;;  %v2022_v15 = vld [vmem:[#allocation2 + $0x180] sm:$0xff]  ;;  %v2024_v16 = vld [vmem:[#allocation2 + $0x190] sm:$0xff] }
  0x14   :  { %101 = vmatprep.subr.mxu0 %v2004_v9  ;;  %172 = vmatprep.subr.mxu1 %v2008_v10  ;;  %v2028_v17 = vld [vmem:[#allocation2 + $0x168] sm:$0xff]  ;;  %v2030_v18 = vld [vmem:[#allocation2 + $0x178] sm:$0xff]  ;;  %v2034_v19 = vld [vmem:[#allocation2 + $0x160] sm:$0xff]  ;;  %p1930_p8 = por %p1929_p7, %p1928_p6 }
  0x15   :  { %102 = vmatpush1.msra.mxu0 %v2010_v11  ;;  %173 = vmatpush1.msra.mxu1 %v2012_v12  ;;  %v2036_v20 = vld [vmem:[#allocation2 + $0x170] sm:$0xff]  ;;  %v2040_v21 = vld [vmem:[#allocation2 + $0x148] sm:$0xff]  ;;  %v2042_v22 = vld [vmem:[#allocation2 + $0x158] sm:$0xff] }
  0x16   :  { %103 = vmatprep.subr.mxu0 %v2016_v13  ;;  %174 = vmatprep.subr.mxu1 %v2018_v14  ;;  %v2046_v23 = vld [vmem:[#allocation2 + $0x140] sm:$0xff]  ;;  %v2048_v24 = vld [vmem:[#allocation2 + $0x150] sm:$0xff]  ;;  %v2052_v25 = vld [vmem:[#allocation2 + $0x128] sm:$0xff]  ;;  %p1931_p9 = pnand %p1930_p8, %p1924_p5 }
  0x17   :  { %104 = vmatpush1.msra.mxu0 %v2022_v15  ;;  %175 = vmatpush1.msra.mxu1 %v2024_v16  ;;  %v2054_v26 = vld [vmem:[#allocation2 + $0x138] sm:$0xff]  ;;  %v2058_v27 = vld [vmem:[#allocation2 + $0x120] sm:$0xff]  ;;  %v2060_v28 = vld [vmem:[#allocation2 + $0x130] sm:$0xff] }
  0x18   :  { %105 = vmatprep.subr.mxu0 %v2028_v17  ;;  %176 = vmatprep.subr.mxu1 %v2030_v18  ;;  %v2064_v29 = vld [vmem:[#allocation2 + $0x108] sm:$0xff]  ;;  %v2066_v30 = vld [vmem:[#allocation2 + $0x118] sm:$0xff]  ;;  %v2070_v31 = vld [vmem:[#allocation2 + $0x100] sm:$0xff] }
  0x19   :  { %106 = vmatpush1.msra.mxu0 %v2034_v19  ;;  %177 = vmatpush1.msra.mxu1 %v2036_v20  ;;  %v2072_v32 = vld [vmem:[#allocation2 + $0x110] sm:$0xff]  ;;  %v2076_v33 = vld [vmem:[#allocation2 + $0xe8] sm:$0xff]  ;;  %v2078_v34 = vld [vmem:[#allocation2 + $0xf8] sm:$0xff] }
  0x1a   :  { %107 = vmatprep.subr.mxu0 %v2040_v21  ;;  %178 = vmatprep.subr.mxu1 %v2042_v22  ;;  %v2082_v35 = vld [vmem:[#allocation2 + $0xe0] sm:$0xff]  ;;  %v2084_v36 = vld [vmem:[#allocation2 + $0xf0] sm:$0xff]  ;;  %v2088_v37 = vld [vmem:[#allocation2 + $0xc8] sm:$0xff] }
  0x1b   :  { %108 = vmatpush1.msra.mxu0 %v2046_v23  ;;  %179 = vmatpush1.msra.mxu1 %v2048_v24  ;;  %v2090_v38 = vld [vmem:[#allocation2 + $0xd8] sm:$0xff]  ;;  %v2094_v39 = vld [vmem:[#allocation2 + $0xc0] sm:$0xff]  ;;  %v2096_v40 = vld [vmem:[#allocation2 + $0xd0] sm:$0xff] }
  0x1c   :  { %109 = vmatprep.subr.mxu0 %v2052_v25  ;;  %180 = vmatprep.subr.mxu1 %v2054_v26  ;;  %v2100_v41 = vld [vmem:[#allocation2 + $0xa8] sm:$0xff]  ;;  %v2102_v42 = vld [vmem:[#allocation2 + $0xb8] sm:$0xff]  ;;  %v2106_v43 = vld [vmem:[#allocation2 + $0xa0] sm:$0xff] }
  0x1d   :  { %110 = vmatpush1.msra.mxu0 %v2058_v27  ;;  %181 = vmatpush1.msra.mxu1 %v2060_v28  ;;  %v2108_v44 = vld [vmem:[#allocation2 + $0xb0] sm:$0xff]  ;;  %v2112_v45 = vld [vmem:[#allocation2 + $0x88] sm:$0xff]  ;;  %v2114_v46 = vld [vmem:[#allocation2 + $0x98] sm:$0xff] }
  0x1e   :  { %111 = vmatprep.subr.mxu0 %v2064_v29  ;;  %182 = vmatprep.subr.mxu1 %v2066_v30  ;;  %2979 = vst [vmem:[#allocation10_spill] sm:$0xff] %v2112_v45  ;;  %v2118_v47 = vld [vmem:[#allocation2 + $0x80] sm:$0xff]  ;;  %v2120_v48 = vld [vmem:[#allocation2 + $0x90] sm:$0xff]  ;;  %v2124_v49 = vld [vmem:[#allocation2 + $0x68] sm:$0xff] }
  0x1f   :  { %112 = vmatpush1.msra.mxu0 %v2070_v31  ;;  %183 = vmatpush1.msra.mxu1 %v2072_v32  ;;  %2980 = vst [vmem:[#allocation11_spill] sm:$0xff] %v2124_v49  ;;  %v2126_v50 = vld [vmem:[#allocation2 + $0x78] sm:$0xff]  ;;  %v2130_v51 = vld [vmem:[#allocation2 + $0x60] sm:$0xff]  ;;  %v2132_v52 = vld [vmem:[#allocation2 + $0x70] sm:$0xff] }
  0x20   :  { %113 = vmatprep.subr.mxu0 %v2076_v33  ;;  %184 = vmatprep.subr.mxu1 %v2078_v34  ;;  %2981 = vst [vmem:[#allocation12_spill] sm:$0xff] %v2126_v50  ;;  %2982 = vst [vmem:[#allocation13_spill] sm:$0xff] %v2130_v51  ;;  %v2136_v53 = vld [vmem:[#allocation2 + $0x48] sm:$0xff]  ;;  %v2138_v54 = vld [vmem:[#allocation2 + $0x58] sm:$0xff] }
  0x21   :  { %114 = vmatpush1.msra.mxu0 %v2082_v35  ;;  %185 = vmatpush1.msra.mxu1 %v2084_v36  ;;  %2983 = vst [vmem:[#allocation14_spill] sm:$0xff] %v2132_v52  ;;  %2984 = vst [vmem:[#allocation15_spill] sm:$0xff] %v2136_v53  ;;  %v2142_v55 = vld [vmem:[#allocation2 + $0x40] sm:$0xff]  ;;  %v2144_v56 = vld [vmem:[#allocation2 + $0x50] sm:$0xff] }
  0x22   :  { %115 = vmatprep.subr.mxu0 %v2088_v37  ;;  %186 = vmatprep.subr.mxu1 %v2090_v38  ;;  %2985 = vst [vmem:[#allocation16_spill] sm:$0xff] %v2138_v54  ;;  %2986 = vst [vmem:[#allocation17_spill] sm:$0xff] %v2142_v55  ;;  %v2148_v57 = vld [vmem:[#allocation2 + $0x28] sm:$0xff]  ;;  %v2150_v58 = vld [vmem:[#allocation2 + $0x38] sm:$0xff] }
  0x23   :  { %116 = vmatpush1.msra.mxu0 %v2094_v39  ;;  %187 = vmatpush1.msra.mxu1 %v2096_v40  ;;  %2987 = vst [vmem:[#allocation18_spill] sm:$0xff] %v2144_v56  ;;  %2988 = vst [vmem:[#allocation19_spill] sm:$0xff] %v2148_v57  ;;  %v2154_v59 = vld [vmem:[#allocation2 + $0x20] sm:$0xff]  ;;  %v2156_v60 = vld [vmem:[#allocation2 + $0x30] sm:$0xff] }
  0x24   :  { %117 = vmatprep.subr.mxu0 %v2100_v41  ;;  %188 = vmatprep.subr.mxu1 %v2102_v42  ;;  %2989 = vst [vmem:[#allocation20_spill] sm:$0xff] %v2150_v58  ;;  %2990 = vst [vmem:[#allocation21_spill] sm:$0xff] %v2154_v59  ;;  %v2160_v61 = vld [vmem:[#allocation2 + $0x8] sm:$0xff]  ;;  %v2162_v62 = vld [vmem:[#allocation2 + $0x18] sm:$0xff] }
  0x25   :  { %118 = vmatpush1.msra.mxu0 %v2106_v43  ;;  %189 = vmatpush1.msra.mxu1 %v2108_v44  ;;  %2991 = vst [vmem:[#allocation22_spill] sm:$0xff] %v2156_v60  ;;  %2992 = vst [vmem:[#allocation23_spill] sm:$0xff] %v2160_v61  ;;  %v2166_v63 = vld [vmem:[#allocation2] sm:$0xff]  ;;  %v2168_v0 = vld [vmem:[#allocation2 + $0x10] sm:$0xff] }
  0x26   :  { %119 = vmatprep.subr.mxu0 %v2112_v45  ;;  %190 = vmatprep.subr.mxu1 %v2114_v46  ;;  %2993 = vst [vmem:[#allocation24_spill] sm:$0xff] %v2162_v62  ;;  %2994 = vst [vmem:[#allocation25_spill] sm:$0xff] %v2166_v63 }
  0x27   :  { %120 = vmatpush1.msra.mxu0 %v2118_v47  ;;  %191 = vmatpush1.msra.mxu1 %v2120_v48  ;;  %2995 = vst [vmem:[#allocation26_spill] sm:$0xff] %v2168_v0 }
  0x28   :  { %121 = vmatprep.subr.mxu0 %v2124_v49  ;;  %192 = vmatprep.subr.mxu1 %v2126_v50 }
  0x29   :  { %122 = vmatpush1.msra.mxu0 %v2130_v51  ;;  %193 = vmatpush1.msra.mxu1 %v2132_v52 }
  0x2a   :  { %123 = vmatprep.subr.mxu0 %v2136_v53  ;;  %194 = vmatprep.subr.mxu1 %v2138_v54 }
  0x2b   :  { %124 = vmatpush1.msra.mxu0 %v2142_v55  ;;  %195 = vmatpush1.msra.mxu1 %v2144_v56  ;;  %v2996_v56 = vmov 0.0  }
  0x2c   :  { %125 = vmatprep.subr.mxu0 %v2148_v57  ;;  %196 = vmatprep.subr.mxu1 %v2150_v58 }
  0x2d   :  { %126 = vmatpush1.msra.mxu0 %v2154_v59  ;;  %197 = vmatpush1.msra.mxu1 %v2156_v60 }
  0x2e   :  { %127 = vmatprep.subr.mxu0 %v2160_v61  ;;  %198 = vmatprep.subr.mxu1 %v2162_v62 }
  0x2f   :  { %128 = vmatpush1.msra.mxu0 %v2166_v63  ;;  %199 = vmatpush1.msra.mxu1 %v2168_v0 }
  0x30   :  { %162 = vmatmul.mubr.f32.vlgmr.msra.gmra.mxu0 %v2996_v56  ;;  %233 = vmatmul.mubr.f32.vlgmr.msra.gmra.mxu1 %v2996_v56 }
  0x31   :  { %284 = vmatprep.subr.mxu0 %v1984_v1  ;;  %355 = vmatprep.subr.mxu1 %v1986_v2 }
  0x32   :  { %285 = vmatpush1.msra.mxu0 %v1988_v3  ;;  %356 = vmatpush1.msra.mxu1 %v1992_v4 }
  0x33   :  { %286 = vmatprep.subr.mxu0 %v1994_v5  ;;  %357 = vmatprep.subr.mxu1 %v1996_v6 }
  0x34   :  { %287 = vmatpush1.msra.mxu0 %v2000_v7  ;;  %358 = vmatpush1.msra.mxu1 %v2002_v8 }
  0x35   :  { %288 = vmatprep.subr.mxu0 %v2004_v9  ;;  %359 = vmatprep.subr.mxu1 %v2008_v10 }
  0x36   :  { %289 = vmatpush1.msra.mxu0 %v2010_v11  ;;  %360 = vmatpush1.msra.mxu1 %v2012_v12 }
  0x37   :  { %290 = vmatprep.subr.mxu0 %v2016_v13  ;;  %361 = vmatprep.subr.mxu1 %v2018_v14 }
  0x38   :  { %291 = vmatpush1.msra.mxu0 %v2022_v15  ;;  %362 = vmatpush1.msra.mxu1 %v2024_v16 }
  0x39   :  { %292 = vmatprep.subr.mxu0 %v2028_v17  ;;  %363 = vmatprep.subr.mxu1 %v2030_v18 }
  0x3a   :  { %293 = vmatpush1.msra.mxu0 %v2034_v19  ;;  %364 = vmatpush1.msra.mxu1 %v2036_v20 }
  0x3b   :  { %294 = vmatprep.subr.mxu0 %v2040_v21  ;;  %365 = vmatprep.subr.mxu1 %v2042_v22 }
  0x3c   :  { %295 = vmatpush1.msra.mxu0 %v2046_v23  ;;  %366 = vmatpush1.msra.mxu1 %v2048_v24 }
  0x3d   :  { %296 = vmatprep.subr.mxu0 %v2052_v25  ;;  %367 = vmatprep.subr.mxu1 %v2054_v26 }
  0x3e   :  { %297 = vmatpush1.msra.mxu0 %v2058_v27  ;;  %368 = vmatpush1.msra.mxu1 %v2060_v28 }
  0x3f   :  { %298 = vmatprep.subr.mxu0 %v2064_v29  ;;  %369 = vmatprep.subr.mxu1 %v2066_v30 }
  0x40   :  { %299 = vmatpush1.msra.mxu0 %v2070_v31  ;;  %370 = vmatpush1.msra.mxu1 %v2072_v32 }
  0x41   :  { %300 = vmatprep.subr.mxu0 %v2076_v33  ;;  %371 = vmatprep.subr.mxu1 %v2078_v34 }
  0x42   :  { %301 = vmatpush1.msra.mxu0 %v2082_v35  ;;  %372 = vmatpush1.msra.mxu1 %v2084_v36 }
  0x43   :  { %302 = vmatprep.subr.mxu0 %v2088_v37  ;;  %373 = vmatprep.subr.mxu1 %v2090_v38 }
  0x44   :  { %303 = vmatpush1.msra.mxu0 %v2094_v39  ;;  %374 = vmatpush1.msra.mxu1 %v2096_v40 }
  0x45   :  { %304 = vmatprep.subr.mxu0 %v2100_v41  ;;  %375 = vmatprep.subr.mxu1 %v2102_v42 }
  0x46   :  { %305 = vmatpush1.msra.mxu0 %v2106_v43  ;;  %376 = vmatpush1.msra.mxu1 %v2108_v44 }
  0x47   :  { %306 = vmatprep.subr.mxu0 %v2112_v45  ;;  %377 = vmatprep.subr.mxu1 %v2114_v46  ;;  %v2997_v45 = vld [vmem:[#allocation18_spill] sm:$0xff] }
  0x48   :  { %307 = vmatpush1.msra.mxu0 %v2118_v47  ;;  %378 = vmatpush1.msra.mxu1 %v2120_v48 }
  0x49   :  { %308 = vmatprep.subr.mxu0 %v2124_v49  ;;  %379 = vmatprep.subr.mxu1 %v2126_v50 }
  0x4a   :  { %309 = vmatpush1.msra.mxu0 %v2130_v51  ;;  %380 = vmatpush1.msra.mxu1 %v2132_v52 }
  0x4b   :  { %310 = vmatprep.subr.mxu0 %v2136_v53  ;;  %381 = vmatprep.subr.mxu1 %v2138_v54 }
  0x4c   :  { %311 = vmatpush1.msra.mxu0 %v2142_v55  ;;  %382 = vmatpush1.msra.mxu1 %v2997_v45 }
  0x4d   :  { %312 = vmatprep.subr.mxu0 %v2148_v57  ;;  %383 = vmatprep.subr.mxu1 %v2150_v58  ;;  %v1951_v58 = vmov 1983009808   ;;  %v248_v57 = vlaneseq }
  0x4e   :  { %313 = vmatpush1.msra.mxu0 %v2154_v59  ;;  %384 = vmatpush1.msra.mxu1 %v2156_v60  ;;  %v246_v59 = vunpack.c.l.s4 %v1951_v58 }
  0x4f   :  { %314 = vmatprep.subr.mxu0 %v2160_v61  ;;  %385 = vmatprep.subr.mxu1 %v2162_v62  ;;  %v249_v45 = vshrl.u32 %v248_v57, 7 }
  0x50   :  { %315 = vmatpush1.msra.mxu0 %v2166_v63  ;;  %348 = vmatprep.mubr.f32.mxu0 %v2996_v56  ;;  %v247_v60 = vunpack.c.0.s8 %v246_v59 }
  0x51   :  { %386 = vmatpush1.msra.mxu1 %v2168_v0  ;;  %419 = vmatprep.mubr.f32.mxu1 %v2996_v56 }
  0x52   :  { %471 = vmatprep.subr.mxu0 %v1984_v1  ;;  %542 = vmatprep.subr.mxu1 %v1986_v2  ;;  %v2246_v62 = vsub.s32 %v247_v60, %v249_v45  ;;  %v32_v2 = vld [vmem:[%s2909_s0] sm:$0xff] }
  0x54   :  { %2998 = vst [vmem:[#allocation27_spill] sm:$0xff] %v2246_v62 }
  0xf0   :  { %v163_v61 = vpop.f32.mrf.mxu0  ;;  %v234_v55 = vpop.f32.mrf.mxu1 }
  0xf2   :  { %v165_v63 = vpop.f32.mrf.mxu0  ;;  %v236_v54 = vpop.f32.mrf.mxu1 }
  0xf3   :  { %v243_v53 = vcombine.low %v163_v61, %v165_v63  ;;  %v244_v52 = vcombine.low %v234_v55, %v236_v54 }
  0xf5   :  { %v251_v0 = vrot.slane %v243_v53, %v2246_v62  ;;  %v258_v56 = vrot.slane %v244_v52, %v2246_v62 }
  0xf7   :  { %v259_v58 = vcombine.low %v251_v0, %v258_v56  ;;  %v3002_v56 = vld [vmem:[#allocation15_spill] sm:$0xff] }
  0xf9   :  { %v261_v1 = vadd.f32 %v259_v58, %v32_v2  ;;  %v3000_v2 = vld [vmem:[#allocation13_spill] sm:$0xff] }
  0xfa   :  { %v3004_v58 = vld [vmem:[#allocation17_spill] sm:$0xff] }
  0xfb   :  { %v1700_v59 = vmul.f32 -1.442695, %v261_v1  ;;  %v269_v45 = vrot.slane %v261_v1, 6  ;;  %v2999_v1 = vld [vmem:[#allocation10_spill] sm:$0xff] }
  0xfd   :  { %1775 = vpow2.f32 %v1700_v59  ;;  %v3005_v59 = vld [vmem:[#allocation18_spill] sm:$0xff] }
 0x10a   :  { %v1776_v57 = vpop.eup %1775 }
 0x10b   :  { %v265_v51 = vadd.f32 1.0, %v1776_v57  ;;  %v3006_v57 = vld [vmem:[#allocation19_spill] sm:$0xff] }
 0x10d   :  { %1777 = vrcp.f32 %v265_v51  ;;  %v3001_v51 = vld [vmem:[#allocation14_spill] sm:$0xff] }
 0x10e   :  { %1779 = vtanh.f32 %v269_v45  ;;  %v3007_v45 = vld [vmem:[#allocation20_spill] sm:$0xff] }
 0x11a   :  { %v1778_v60 = vpop.eup %1777 }
 0x11b   :  { %v273_v61 = vrot.slane %v1778_v60, 2  ;;  %v1780_v54 = vpop.eup %1779  ;;  %v279_v52 = vrot.slane %v1778_v60, 4 }
 0x11c   :  { %v276_v55 = vmul.f32 %v1780_v54, %v1778_v60  ;;  %v3008_v60 = vld [vmem:[#allocation21_spill] sm:$0xff]  ;;  %v3010_v54 = vld [vmem:[#allocation23_spill] sm:$0xff] }
 0x11d   :  { %v275_v53 = vmul.f32 0.0, %v273_v61  ;;  %v3009_v61 = vld [vmem:[#allocation22_spill] sm:$0xff] }
 0x11f   :  { %v2253_v63 = vadd.f32 %v276_v55, %v275_v53  ;;  %v3011_v55 = vld [vmem:[#allocation24_spill] sm:$0xff]  ;;  %v3012_v53 = vld [vmem:[#allocation25_spill] sm:$0xff] }
 0x121   :  { %1781 = vtanh.f32 %v2253_v63 }
 0x12e   :  { %v1782_v62 = vpop.eup %1781 }
 0x12f   :  { %v281_v0 = vmul.f32 %v1782_v62, %v279_v52  ;;  %v3003_v62 = vld [vmem:[#allocation16_spill] sm:$0xff]  ;;  %v3013_v52 = vmov 0.0  }
 0x131   :  { %349 = vmatmul.mubr.f32.vlgmr.msra.gmra.mxu0 %v281_v0  ;;  %420 = vmatmul.mubr.f32.vlgmr.msra.gmra.mxu1 %v281_v0  ;;  %v3014_v0 = vld [vmem:[#allocation26_spill] sm:$0xff] }
 0x132   :  { %472 = vmatpush1.msra.mxu0 %v1988_v3  ;;  %543 = vmatpush1.msra.mxu1 %v1992_v4 }
 0x133   :  { %473 = vmatprep.subr.mxu0 %v1994_v5  ;;  %544 = vmatprep.subr.mxu1 %v1996_v6 }
 0x134   :  { %474 = vmatpush1.msra.mxu0 %v2000_v7  ;;  %545 = vmatpush1.msra.mxu1 %v2002_v8 }
 0x135   :  { %475 = vmatprep.subr.mxu0 %v2004_v9  ;;  %546 = vmatprep.subr.mxu1 %v2008_v10 }
 0x136   :  { %476 = vmatpush1.msra.mxu0 %v2010_v11  ;;  %547 = vmatpush1.msra.mxu1 %v2012_v12 }
 0x137   :  { %477 = vmatprep.subr.mxu0 %v2016_v13  ;;  %548 = vmatprep.subr.mxu1 %v2018_v14 }
 0x138   :  { %478 = vmatpush1.msra.mxu0 %v2022_v15  ;;  %549 = vmatpush1.msra.mxu1 %v2024_v16 }
 0x139   :  { %479 = vmatprep.subr.mxu0 %v2028_v17  ;;  %550 = vmatprep.subr.mxu1 %v2030_v18 }
 0x13a   :  { %480 = vmatpush1.msra.mxu0 %v2034_v19  ;;  %551 = vmatpush1.msra.mxu1 %v2036_v20 }
 0x13b   :  { %481 = vmatprep.subr.mxu0 %v2040_v21  ;;  %552 = vmatprep.subr.mxu1 %v2042_v22 }
 0x13c   :  { %482 = vmatpush1.msra.mxu0 %v2046_v23  ;;  %553 = vmatpush1.msra.mxu1 %v2048_v24 }
 0x13d   :  { %483 = vmatprep.subr.mxu0 %v2052_v25  ;;  %554 = vmatprep.subr.mxu1 %v2054_v26 }
 0x13e   :  { %484 = vmatpush1.msra.mxu0 %v2058_v27  ;;  %555 = vmatpush1.msra.mxu1 %v2060_v28 }
 0x13f   :  { %485 = vmatprep.subr.mxu0 %v2064_v29  ;;  %556 = vmatprep.subr.mxu1 %v2066_v30 }
 0x140   :  { %486 = vmatpush1.msra.mxu0 %v2070_v31  ;;  %557 = vmatpush1.msra.mxu1 %v2072_v32 }
 0x141   :  { %487 = vmatprep.subr.mxu0 %v2076_v33  ;;  %558 = vmatprep.subr.mxu1 %v2078_v34 }
 0x142   :  { %488 = vmatpush1.msra.mxu0 %v2082_v35  ;;  %559 = vmatpush1.msra.mxu1 %v2084_v36 }
 0x143   :  { %489 = vmatprep.subr.mxu0 %v2088_v37  ;;  %560 = vmatprep.subr.mxu1 %v2090_v38 }
 0x144   :  { %490 = vmatpush1.msra.mxu0 %v2094_v39  ;;  %561 = vmatpush1.msra.mxu1 %v2096_v40 }
 0x145   :  { %491 = vmatprep.subr.mxu0 %v2100_v41  ;;  %562 = vmatprep.subr.mxu1 %v2102_v42 }
 0x146   :  { %492 = vmatpush1.msra.mxu0 %v2106_v43  ;;  %563 = vmatpush1.msra.mxu1 %v2108_v44 }
 0x147   :  { %493 = vmatprep.subr.mxu0 %v2999_v1  ;;  %564 = vmatprep.subr.mxu1 %v2114_v46 }
 0x148   :  { %494 = vmatpush1.msra.mxu0 %v2118_v47  ;;  %565 = vmatpush1.msra.mxu1 %v2120_v48 }
 0x149   :  { %495 = vmatprep.subr.mxu0 %v2124_v49  ;;  %566 = vmatprep.subr.mxu1 %v2126_v50 }
 0x14a   :  { %496 = vmatpush1.msra.mxu0 %v3000_v2  ;;  %567 = vmatpush1.msra.mxu1 %v3001_v51 }
 0x14b   :  { %497 = vmatprep.subr.mxu0 %v3002_v56  ;;  %568 = vmatprep.subr.mxu1 %v3003_v62  ;;  %v3017_v56 = vld [vmem:[#allocation27_spill] sm:$0xff] }
 0x14c   :  { %498 = vmatpush1.msra.mxu0 %v3004_v58  ;;  %569 = vmatpush1.msra.mxu1 %v3005_v59  ;;  %v3015_v59 = vld [vmem:[#allocation8_spill] sm:$0xff] }
 0x14d   :  { %499 = vmatprep.subr.mxu0 %v3006_v57  ;;  %570 = vmatprep.subr.mxu1 %v3007_v45  ;;  %v3016_v57 = vld [vmem:[#allocation9_spill] sm:$0xff] }
 0x14e   :  { %500 = vmatpush1.msra.mxu0 %v3008_v60  ;;  %571 = vmatpush1.msra.mxu1 %v3009_v61 }
 0x14f   :  { %501 = vmatprep.subr.mxu0 %v3010_v54  ;;  %572 = vmatprep.subr.mxu1 %v3011_v55 }
 0x150   :  { %502 = vmatpush1.msra.mxu0 %v3012_v53  ;;  %535 = vmatprep.mubr.f32.mxu0 %v3013_v52 }
 0x151   :  { %573 = vmatpush1.msra.mxu1 %v3014_v0  ;;  %606 = vmatprep.mubr.f32.mxu1 %v3013_v52  ;;  %v1701_v0 = vld [vmem:[%s2909_s0 + $0x8] sm:$0xff] }
 0x152   :  { %658 = vmatprep.subr.mxu0 %v3015_v59  ;;  %729 = vmatprep.subr.mxu1 %v3016_v57 }
 0x1f1   :  { %v350_v45 = vpop.f32.mrf.mxu0  ;;  %v421_v60 = vpop.f32.mrf.mxu1 }
 0x1f3   :  { %v352_v58 = vpop.f32.mrf.mxu0  ;;  %v423_v61 = vpop.f32.mrf.mxu1 }
 0x1f4   :  { %v430_v62 = vcombine.low %v350_v45, %v352_v58  ;;  %v431_v54 = vcombine.low %v421_v60, %v423_v61 }
 0x1f6   :  { %v438_v55 = vrot.slane %v430_v62, %v3017_v56  ;;  %v445_v53 = vrot.slane %v431_v54, %v3017_v56 }
 0x1f8   :  { %v446_v51 = vcombine.low %v438_v55, %v445_v53  ;;  %v3024_v53 = vld [vmem:[#allocation17_spill] sm:$0xff] }
 0x1fa   :  { %v448_v52 = vadd.f32 %v1701_v0, %v446_v51  ;;  %v3026_v0 = vld [vmem:[#allocation19_spill] sm:$0xff] }
 0x1fc   :  { %v1702_v2 = vmul.f32 -1.442695, %v448_v52  ;;  %v456_v50 = vrot.slane %v448_v52, 6  ;;  %v3025_v52 = vld [vmem:[#allocation18_spill] sm:$0xff] }
 0x1fe   :  { %1783 = vpow2.f32 %v1702_v2  ;;  %v3021_v2 = vld [vmem:[#allocation14_spill] sm:$0xff] }
 0x20b   :  { %v1784_v59 = vpop.eup %1783 }
 0x20c   :  { %v452_v57 = vadd.f32 1.0, %v1784_v59  ;;  %v3022_v59 = vld [vmem:[#allocation15_spill] sm:$0xff] }
 0x20e   :  { %1785 = vrcp.f32 %v452_v57  ;;  %v3023_v57 = vld [vmem:[#allocation16_spill] sm:$0xff] }
 0x20f   :  { %1787 = vtanh.f32 %v456_v50  ;;  %v3019_v50 = vld [vmem:[#allocation12_spill] sm:$0xff] }
 0x21b   :  { %v1786_v49 = vpop.eup %1785 }
 0x21c   :  { %v460_v58 = vrot.slane %v1786_v49, 2  ;;  %v1788_v45 = vpop.eup %1787  ;;  %v466_v54 = vrot.slane %v1786_v49, 4 }
 0x21d   :  { %v463_v60 = vmul.f32 %v1788_v45, %v1786_v49  ;;  %v3018_v49 = vld [vmem:[#allocation11_spill] sm:$0xff]  ;;  %v3028_v45 = vld [vmem:[#allocation21_spill] sm:$0xff] }
 0x21e   :  { %v462_v62 = vmul.f32 %v460_v58, %v2253_v63  ;;  %v3020_v63 = vld [vmem:[#allocation13_spill] sm:$0xff]  ;;  %v3027_v58 = vld [vmem:[#allocation20_spill] sm:$0xff] }
 0x220   :  { %v2328_v61 = vadd.f32 %v463_v60, %v462_v62  ;;  %v3029_v60 = vld [vmem:[#allocation22_spill] sm:$0xff]  ;;  %v3030_v62 = vld [vmem:[#allocation23_spill] sm:$0xff] }
 0x222   :  { %1789 = vtanh.f32 %v2328_v61 }
 0x22f   :  { %v1790_v55 = vpop.eup %1789 }
 0x230   :  { %v468_v51 = vmul.f32 %v1790_v55, %v466_v54  ;;  %v3031_v54 = vld [vmem:[#allocation24_spill] sm:$0xff]  ;;  %v3032_v55 = vld [vmem:[#allocation25_spill] sm:$0xff] }
 0x232   :  { %536 = vmatmul.mubr.f32.vlgmr.msra.gmra.mxu0 %v468_v51  ;;  %607 = vmatmul.mubr.f32.vlgmr.msra.gmra.mxu1 %v468_v51  ;;  %v3033_v51 = vmov 0.0  }
 0x233   :  { %659 = vmatpush1.msra.mxu0 %v1988_v3  ;;  %730 = vmatpush1.msra.mxu1 %v1992_v4 }
 0x234   :  { %660 = vmatprep.subr.mxu0 %v1994_v5  ;;  %731 = vmatprep.subr.mxu1 %v1996_v6 }
 0x235   :  { %661 = vmatpush1.msra.mxu0 %v2000_v7  ;;  %732 = vmatpush1.msra.mxu1 %v2002_v8 }
 0x236   :  { %662 = vmatprep.subr.mxu0 %v2004_v9  ;;  %733 = vmatprep.subr.mxu1 %v2008_v10 }
 0x237   :  { %663 = vmatpush1.msra.mxu0 %v2010_v11  ;;  %734 = vmatpush1.msra.mxu1 %v2012_v12 }
 0x238   :  { %664 = vmatprep.subr.mxu0 %v2016_v13  ;;  %735 = vmatprep.subr.mxu1 %v2018_v14 }
 0x239   :  { %665 = vmatpush1.msra.mxu0 %v2022_v15  ;;  %736 = vmatpush1.msra.mxu1 %v2024_v16 }
 0x23a   :  { %666 = vmatprep.subr.mxu0 %v2028_v17  ;;  %737 = vmatprep.subr.mxu1 %v2030_v18 }
 0x23b   :  { %667 = vmatpush1.msra.mxu0 %v2034_v19  ;;  %738 = vmatpush1.msra.mxu1 %v2036_v20 }
 0x23c   :  { %668 = vmatprep.subr.mxu0 %v2040_v21  ;;  %739 = vmatprep.subr.mxu1 %v2042_v22 }
 0x23d   :  { %669 = vmatpush1.msra.mxu0 %v2046_v23  ;;  %740 = vmatpush1.msra.mxu1 %v2048_v24 }
 0x23e   :  { %670 = vmatprep.subr.mxu0 %v2052_v25  ;;  %741 = vmatprep.subr.mxu1 %v2054_v26 }
 0x23f   :  { %671 = vmatpush1.msra.mxu0 %v2058_v27  ;;  %742 = vmatpush1.msra.mxu1 %v2060_v28 }
 0x240   :  { %672 = vmatprep.subr.mxu0 %v2064_v29  ;;  %743 = vmatprep.subr.mxu1 %v2066_v30 }
 0x241   :  { %673 = vmatpush1.msra.mxu0 %v2070_v31  ;;  %744 = vmatpush1.msra.mxu1 %v2072_v32 }
 0x242   :  { %674 = vmatprep.subr.mxu0 %v2076_v33  ;;  %745 = vmatprep.subr.mxu1 %v2078_v34 }
 0x243   :  { %675 = vmatpush1.msra.mxu0 %v2082_v35  ;;  %746 = vmatpush1.msra.mxu1 %v2084_v36 }
 0x244   :  { %676 = vmatprep.subr.mxu0 %v2088_v37  ;;  %747 = vmatprep.subr.mxu1 %v2090_v38 }
 0x245   :  { %677 = vmatpush1.msra.mxu0 %v2094_v39  ;;  %748 = vmatpush1.msra.mxu1 %v2096_v40 }
 0x246   :  { %678 = vmatprep.subr.mxu0 %v2100_v41  ;;  %749 = vmatprep.subr.mxu1 %v2102_v42 }
 0x247   :  { %679 = vmatpush1.msra.mxu0 %v2106_v43  ;;  %750 = vmatpush1.msra.mxu1 %v2108_v44 }
 0x248   :  { %680 = vmatprep.subr.mxu0 %v2999_v1  ;;  %751 = vmatprep.subr.mxu1 %v2114_v46 }
 0x249   :  { %681 = vmatpush1.msra.mxu0 %v2118_v47  ;;  %752 = vmatpush1.msra.mxu1 %v2120_v48 }
 0x24a   :  { %682 = vmatprep.subr.mxu0 %v3018_v49  ;;  %753 = vmatprep.subr.mxu1 %v3019_v50 }
 0x24b   :  { %683 = vmatpush1.msra.mxu0 %v3020_v63  ;;  %754 = vmatpush1.msra.mxu1 %v3021_v2 }
 0x24c   :  { %684 = vmatprep.subr.mxu0 %v3022_v59  ;;  %755 = vmatprep.subr.mxu1 %v3023_v57  ;;  %v3034_v57 = vld [vmem:[#allocation26_spill] sm:$0xff] }
 0x24d   :  { %685 = vmatpush1.msra.mxu0 %v3024_v53  ;;  %756 = vmatpush1.msra.mxu1 %v3025_v52  ;;  %v3035_v52 = vld [vmem:[#allocation8_spill] sm:$0xff] }
 0x24e   :  { %686 = vmatprep.subr.mxu0 %v3026_v0  ;;  %757 = vmatprep.subr.mxu1 %v3027_v58  ;;  %v3036_v0 = vld [vmem:[#allocation9_spill] sm:$0xff] }
 0x24f   :  { %687 = vmatpush1.msra.mxu0 %v3028_v45  ;;  %758 = vmatpush1.msra.mxu1 %v3029_v60 }
 0x250   :  { %688 = vmatprep.subr.mxu0 %v3030_v62  ;;  %759 = vmatprep.subr.mxu1 %v3031_v54 }
 0x251   :  { %689 = vmatpush1.msra.mxu0 %v3032_v55  ;;  %722 = vmatprep.mubr.f32.mxu0 %v3033_v51 }
 0x252   :  { %760 = vmatpush1.msra.mxu1 %v3034_v57  ;;  %793 = vmatprep.mubr.f32.mxu1 %v3033_v51  ;;  %v1703_v57 = vld [vmem:[%s2909_s0 + $0x10] sm:$0xff] }
 0x253   :  { %845 = vmatprep.subr.mxu0 %v3035_v52  ;;  %916 = vmatprep.subr.mxu1 %v3036_v0 }
 0x2f2   :  { %v537_v58 = vpop.f32.mrf.mxu0  ;;  %v608_v45 = vpop.f32.mrf.mxu1 }
 0x2f4   :  { %v539_v53 = vpop.f32.mrf.mxu0  ;;  %v610_v60 = vpop.f32.mrf.mxu1 }
 0x2f5   :  { %v617_v59 = vcombine.low %v537_v58, %v539_v53  ;;  %v618_v62 = vcombine.low %v608_v45, %v610_v60 }
 0x2f7   :  { %v625_v54 = vrot.slane %v617_v59, %v3017_v56  ;;  %v632_v55 = vrot.slane %v618_v62, %v3017_v56 }
 0x2f9   :  { %v633_v2 = vcombine.low %v625_v54, %v632_v55 }
 0x2fb   :  { %v635_v51 = vadd.f32 %v1703_v57, %v633_v2  ;;  %v3053_v57 = vld [vmem:[#allocation26_spill] sm:$0xff] }
 0x2fd   :  { %v1704_v63 = vmul.f32 -1.442695, %v635_v51  ;;  %v643_v50 = vrot.slane %v635_v51, 6 }
 0x2ff   :  { %1791 = vpow2.f32 %v1704_v63  ;;  %v3052_v63 = vmov 0.0  }
 0x30c   :  { %v1792_v52 = vpop.eup %1791 }
 0x30d   :  { %v639_v0 = vadd.f32 1.0, %v1792_v52  ;;  %v3054_v52 = vld [vmem:[#allocation8_spill] sm:$0xff] }
 0x30f   :  { %1793 = vrcp.f32 %v639_v0  ;;  %v3055_v0 = vld [vmem:[#allocation9_spill] sm:$0xff] }
 0x310   :  { %1795 = vtanh.f32 %v643_v50  ;;  %v3051_v50 = vld [vmem:[#allocation25_spill] sm:$0xff] }
 0x31c   :  { %v1794_v49 = vpop.eup %1793 }
 0x31d   :  { %v647_v53 = vrot.slane %v1794_v49, 2  ;;  %v1796_v58 = vpop.eup %1795  ;;  %v653_v62 = vrot.slane %v1794_v49, 4 }
 0x31e   :  { %v650_v45 = vmul.f32 %v1796_v58, %v1794_v49  ;;  %v3050_v49 = vld [vmem:[#allocation24_spill] sm:$0xff] }
 0x31f   :  { %v649_v59 = vmul.f32 %v647_v53, %v2328_v61  ;;  %v3049_v61 = vld [vmem:[#allocation23_spill] sm:$0xff] }
 0x321   :  { %v2403_v60 = vadd.f32 %v650_v45, %v649_v59 }
 0x323   :  { %1797 = vtanh.f32 %v2403_v60 }
 0x330   :  { %v1798_v54 = vpop.eup %1797 }
 0x331   :  { %v655_v2 = vmul.f32 %v1798_v54, %v653_v62 }
 0x333   :  { %723 = vmatmul.mubr.f32.vlgmr.msra.gmra.mxu0 %v655_v2  ;;  %794 = vmatmul.mubr.f32.vlgmr.msra.gmra.mxu1 %v655_v2  ;;  %v1705_v2 = vld [vmem:[%s2909_s0 + $0x18] sm:$0xff] }
 0x334   :  { %846 = vmatpush1.msra.mxu0 %v1988_v3  ;;  %917 = vmatpush1.msra.mxu1 %v1992_v4  ;;  %v3037_v3 = vld [vmem:[#allocation11_spill] sm:$0xff]  ;;  %v3038_v4 = vld [vmem:[#allocation12_spill] sm:$0xff] }
 0x335   :  { %847 = vmatprep.subr.mxu0 %v1994_v5  ;;  %918 = vmatprep.subr.mxu1 %v1996_v6  ;;  %v3039_v5 = vld [vmem:[#allocation13_spill] sm:$0xff]  ;;  %v3040_v6 = vld [vmem:[#allocation14_spill] sm:$0xff] }
 0x336   :  { %848 = vmatpush1.msra.mxu0 %v2000_v7  ;;  %919 = vmatpush1.msra.mxu1 %v2002_v8  ;;  %v3041_v7 = vld [vmem:[#allocation15_spill] sm:$0xff]  ;;  %v3042_v8 = vld [vmem:[#allocation16_spill] sm:$0xff] }
 0x337   :  { %849 = vmatprep.subr.mxu0 %v2004_v9  ;;  %920 = vmatprep.subr.mxu1 %v2008_v10  ;;  %v3043_v9 = vld [vmem:[#allocation17_spill] sm:$0xff]  ;;  %v3044_v10 = vld [vmem:[#allocation18_spill] sm:$0xff] }
 0x338   :  { %850 = vmatpush1.msra.mxu0 %v2010_v11  ;;  %921 = vmatpush1.msra.mxu1 %v2012_v12  ;;  %v3045_v11 = vld [vmem:[#allocation19_spill] sm:$0xff]  ;;  %v3046_v12 = vld [vmem:[#allocation20_spill] sm:$0xff] }
 0x339   :  { %851 = vmatprep.subr.mxu0 %v2016_v13  ;;  %922 = vmatprep.subr.mxu1 %v2018_v14  ;;  %v3047_v13 = vld [vmem:[#allocation21_spill] sm:$0xff]  ;;  %v3048_v14 = vld [vmem:[#allocation22_spill] sm:$0xff] }
 0x33a   :  { %852 = vmatpush1.msra.mxu0 %v2022_v15  ;;  %923 = vmatpush1.msra.mxu1 %v2024_v16 }
 0x33b   :  { %853 = vmatprep.subr.mxu0 %v2028_v17  ;;  %924 = vmatprep.subr.mxu1 %v2030_v18 }
 0x33c   :  { %854 = vmatpush1.msra.mxu0 %v2034_v19  ;;  %925 = vmatpush1.msra.mxu1 %v2036_v20 }
 0x33d   :  { %855 = vmatprep.subr.mxu0 %v2040_v21  ;;  %926 = vmatprep.subr.mxu1 %v2042_v22 }
 0x33e   :  { %856 = vmatpush1.msra.mxu0 %v2046_v23  ;;  %927 = vmatpush1.msra.mxu1 %v2048_v24 }
 0x33f   :  { %857 = vmatprep.subr.mxu0 %v2052_v25  ;;  %928 = vmatprep.subr.mxu1 %v2054_v26 }
 0x340   :  { %858 = vmatpush1.msra.mxu0 %v2058_v27  ;;  %929 = vmatpush1.msra.mxu1 %v2060_v28 }
 0x341   :  { %859 = vmatprep.subr.mxu0 %v2064_v29  ;;  %930 = vmatprep.subr.mxu1 %v2066_v30 }
 0x342   :  { %860 = vmatpush1.msra.mxu0 %v2070_v31  ;;  %931 = vmatpush1.msra.mxu1 %v2072_v32 }
 0x343   :  { %861 = vmatprep.subr.mxu0 %v2076_v33  ;;  %932 = vmatprep.subr.mxu1 %v2078_v34 }
 0x344   :  { %862 = vmatpush1.msra.mxu0 %v2082_v35  ;;  %933 = vmatpush1.msra.mxu1 %v2084_v36 }
 0x345   :  { %863 = vmatprep.subr.mxu0 %v2088_v37  ;;  %934 = vmatprep.subr.mxu1 %v2090_v38 }
 0x346   :  { %864 = vmatpush1.msra.mxu0 %v2094_v39  ;;  %935 = vmatpush1.msra.mxu1 %v2096_v40 }
 0x347   :  { %865 = vmatprep.subr.mxu0 %v2100_v41  ;;  %936 = vmatprep.subr.mxu1 %v2102_v42 }
 0x348   :  { %866 = vmatpush1.msra.mxu0 %v2106_v43  ;;  %937 = vmatpush1.msra.mxu1 %v2108_v44 }
 0x349   :  { %867 = vmatprep.subr.mxu0 %v2999_v1  ;;  %938 = vmatprep.subr.mxu1 %v2114_v46 }
 0x34a   :  { %868 = vmatpush1.msra.mxu0 %v2118_v47  ;;  %939 = vmatpush1.msra.mxu1 %v2120_v48 }
 0x34b   :  { %869 = vmatprep.subr.mxu0 %v3037_v3  ;;  %940 = vmatprep.subr.mxu1 %v3038_v4 }
 0x34c   :  { %870 = vmatpush1.msra.mxu0 %v3039_v5  ;;  %941 = vmatpush1.msra.mxu1 %v3040_v6 }
 0x34d   :  { %871 = vmatprep.subr.mxu0 %v3041_v7  ;;  %942 = vmatprep.subr.mxu1 %v3042_v8 }
 0x34e   :  { %872 = vmatpush1.msra.mxu0 %v3043_v9  ;;  %943 = vmatpush1.msra.mxu1 %v3044_v10 }
 0x34f   :  { %873 = vmatprep.subr.mxu0 %v3045_v11  ;;  %944 = vmatprep.subr.mxu1 %v3046_v12 }
 0x350   :  { %874 = vmatpush1.msra.mxu0 %v3047_v13  ;;  %945 = vmatpush1.msra.mxu1 %v3048_v14 }
 0x351   :  { %875 = vmatprep.subr.mxu0 %v3049_v61  ;;  %946 = vmatprep.subr.mxu1 %v3050_v49 }
 0x352   :  { %876 = vmatpush1.msra.mxu0 %v3051_v50  ;;  %909 = vmatprep.mubr.f32.mxu0 %v3052_v63 }
 0x353   :  { %947 = vmatpush1.msra.mxu1 %v3053_v57  ;;  %980 = vmatprep.mubr.f32.mxu1 %v3052_v63 }
 0x354   :  { %1032 = vmatprep.subr.mxu0 %v3054_v52  ;;  %1103 = vmatprep.subr.mxu1 %v3055_v0 }
 0x3f3   :  { %v724_v55 = vpop.f32.mrf.mxu0  ;;  %v795_v51 = vpop.f32.mrf.mxu1 }
 0x3f5   :  { %v726_v53 = vpop.f32.mrf.mxu0  ;;  %v797_v58 = vpop.f32.mrf.mxu1 }
 0x3f6   :  { %v804_v45 = vcombine.low %v724_v55, %v726_v53  ;;  %v805_v59 = vcombine.low %v795_v51, %v797_v58 }
 0x3f8   :  { %v812_v62 = vrot.slane %v804_v45, %v3017_v56  ;;  %v819_v54 = vrot.slane %v805_v59, %v3017_v56 }
 0x3fa   :  { %v820_v57 = vcombine.low %v812_v62, %v819_v54  ;;  %v2496_v54 = vld [vmem:[#allocation2 + $0x1d0] sm:$0xff] }
 0x3fc   :  { %v822_v63 = vadd.f32 %v1705_v2, %v820_v57  ;;  %v2499_v2 = vld [vmem:[#allocation2 + $0x1a8] sm:$0xff] }
 0x3fe   :  { %v1706_v50 = vmul.f32 -1.442695, %v822_v63  ;;  %v830_v49 = vrot.slane %v822_v63, 6  ;;  %v2487_v63 = vld [vmem:[#allocation2 + $0x1c8] sm:$0xff] }
 0x400   :  { %1799 = vpow2.f32 %v1706_v50  ;;  %v2481_v50 = vld [vmem:[#allocation2 + $0x1e0] sm:$0xff] }
 0x40d   :  { %v1800_v52 = vpop.eup %1799 }
 0x40e   :  { %v826_v0 = vadd.f32 1.0, %v1800_v52  ;;  %v2502_v52 = vld [vmem:[#allocation2 + $0x1b8] sm:$0xff] }
 0x410   :  { %1801 = vrcp.f32 %v826_v0  ;;  %v2505_v0 = vld [vmem:[#allocation2 + $0x1a0] sm:$0xff] }
 0x411   :  { %1803 = vtanh.f32 %v830_v49  ;;  %v2484_v49 = vld [vmem:[#allocation2 + $0x1f0] sm:$0xff] }
 0x41d   :  { %v1802_v61 = vpop.eup %1801 }
 0x41e   :  { %v834_v55 = vrot.slane %v1802_v61, 2  ;;  %v1804_v51 = vpop.eup %1803  ;;  %v840_v59 = vrot.slane %v1802_v61, 4 }
 0x41f   :  { %v837_v53 = vmul.f32 %v1804_v51, %v1802_v61  ;;  %v2493_v61 = vld [vmem:[#allocation2 + $0x1c0] sm:$0xff]  ;;  %v2511_v51 = vld [vmem:[#allocation2 + $0x188] sm:$0xff] }
 0x420   :  { %v836_v58 = vmul.f32 %v834_v55, %v2403_v60  ;;  %v2490_v60 = vld [vmem:[#allocation2 + $0x1d8] sm:$0xff]  ;;  %v2508_v55 = vld [vmem:[#allocation2 + $0x1b0] sm:$0xff] }
 0x422   :  { %v2478_v45 = vadd.f32 %v837_v53, %v836_v58  ;;  %v2514_v53 = vld [vmem:[#allocation2 + $0x198] sm:$0xff] }
 0x423   :  { %v2641_v58 = vld [vmem:[#allocation2 + $0x118] sm:$0xff] }
 0x424   :  { %1805 = vtanh.f32 %v2478_v45 }
 0x431   :  { %v1806_v62 = vpop.eup %1805 }
 0x432   :  { %v842_v57 = vmul.f32 %v1806_v62, %v840_v59  ;;  %v2647_v59 = vld [vmem:[#allocation2 + $0x110] sm:$0xff]  ;;  %v2650_v62 = vld [vmem:[#allocation2 + $0xe8] sm:$0xff] }
 0x434   :  { %910 = vmatmul.mubr.f32.vlgmr.msra.gmra.mxu0 %v842_v57  ;;  %981 = vmatmul.mubr.f32.vlgmr.msra.gmra.mxu1 %v842_v57  ;;  %v2653_v57 = vld [vmem:[#allocation2 + $0xf8] sm:$0xff] }
 0x435   :  { %1033 = vmatpush1.msra.mxu0 %v2481_v50  ;;  %1104 = vmatpush1.msra.mxu1 %v2484_v49 }
 0x436   :  { %1034 = vmatprep.subr.mxu0 %v2487_v63  ;;  %1105 = vmatprep.subr.mxu1 %v2490_v60 }
 0x437   :  { %1035 = vmatpush1.msra.mxu0 %v2493_v61  ;;  %1106 = vmatpush1.msra.mxu1 %v2496_v54 }
 0x438   :  { %1036 = vmatprep.subr.mxu0 %v2499_v2  ;;  %1107 = vmatprep.subr.mxu1 %v2502_v52 }
 0x439   :  { %1037 = vmatpush1.msra.mxu0 %v2505_v0  ;;  %1108 = vmatpush1.msra.mxu1 %v2508_v55 }
 0x43a   :  { %1038 = vmatprep.subr.mxu0 %v2511_v51  ;;  %1109 = vmatprep.subr.mxu1 %v2514_v53 }
 0x43b   :  { %1039 = vmatpush1.msra.mxu0 %v2022_v15  ;;  %1110 = vmatpush1.msra.mxu1 %v2024_v16  ;;  %v3056_v15 = vld [vmem:[#allocation23_spill] sm:$0xff]  ;;  %v3057_v16 = vld [vmem:[#allocation24_spill] sm:$0xff] }
 0x43c   :  { %1040 = vmatprep.subr.mxu0 %v2028_v17  ;;  %1111 = vmatprep.subr.mxu1 %v2030_v18  ;;  %v3058_v17 = vld [vmem:[#allocation25_spill] sm:$0xff]  ;;  %v3059_v18 = vmov 0.0  }
 0x43d   :  { %1041 = vmatpush1.msra.mxu0 %v2034_v19  ;;  %1112 = vmatpush1.msra.mxu1 %v2036_v20  ;;  %v3060_v19 = vld [vmem:[#allocation26_spill] sm:$0xff]  ;;  %v2569_v20 = vld [vmem:[#allocation2 + $0x1e8] sm:$0xff] }
 0x43e   :  { %1042 = vmatprep.subr.mxu0 %v2040_v21  ;;  %1113 = vmatprep.subr.mxu1 %v2042_v22  ;;  %v2572_v21 = vld [vmem:[#allocation2 + $0x1f8] sm:$0xff] }
 0x43f   :  { %1043 = vmatpush1.msra.mxu0 %v2046_v23  ;;  %1114 = vmatpush1.msra.mxu1 %v2048_v24 }
 0x440   :  { %1044 = vmatprep.subr.mxu0 %v2052_v25  ;;  %1115 = vmatprep.subr.mxu1 %v2054_v26 }
 0x441   :  { %1045 = vmatpush1.msra.mxu0 %v2058_v27  ;;  %1116 = vmatpush1.msra.mxu1 %v2060_v28 }
 0x442   :  { %1046 = vmatprep.subr.mxu0 %v2064_v29  ;;  %1117 = vmatprep.subr.mxu1 %v2066_v30  ;;  %v1707_v30 = vld [vmem:[%s2909_s0 + $0x20] sm:$0xff] }
 0x443   :  { %1047 = vmatpush1.msra.mxu0 %v2070_v31  ;;  %1118 = vmatpush1.msra.mxu1 %v2072_v32 }
 0x444   :  { %1048 = vmatprep.subr.mxu0 %v2076_v33  ;;  %1119 = vmatprep.subr.mxu1 %v2078_v34 }
 0x445   :  { %1049 = vmatpush1.msra.mxu0 %v2082_v35  ;;  %1120 = vmatpush1.msra.mxu1 %v2084_v36 }
 0x446   :  { %1050 = vmatprep.subr.mxu0 %v2088_v37  ;;  %1121 = vmatprep.subr.mxu1 %v2090_v38 }
 0x447   :  { %1051 = vmatpush1.msra.mxu0 %v2094_v39  ;;  %1122 = vmatpush1.msra.mxu1 %v2096_v40 }
 0x448   :  { %1052 = vmatprep.subr.mxu0 %v2100_v41  ;;  %1123 = vmatprep.subr.mxu1 %v2102_v42 }
 0x449   :  { %1053 = vmatpush1.msra.mxu0 %v2106_v43  ;;  %1124 = vmatpush1.msra.mxu1 %v2108_v44 }
 0x44a   :  { %1054 = vmatprep.subr.mxu0 %v2999_v1  ;;  %1125 = vmatprep.subr.mxu1 %v2114_v46  ;;  %v2602_v1 = vld [vmem:[#allocation2 + $0x168] sm:$0xff] }
 0x44b   :  { %1055 = vmatpush1.msra.mxu0 %v2118_v47  ;;  %1126 = vmatpush1.msra.mxu1 %v2120_v48  ;;  %v2596_v47 = vld [vmem:[#allocation2 + $0x180] sm:$0xff]  ;;  %v2599_v48 = vld [vmem:[#allocation2 + $0x190] sm:$0xff] }
 0x44c   :  { %1056 = vmatprep.subr.mxu0 %v3037_v3  ;;  %1127 = vmatprep.subr.mxu1 %v3038_v4  ;;  %v2605_v3 = vld [vmem:[#allocation2 + $0x178] sm:$0xff]  ;;  %v2608_v4 = vld [vmem:[#allocation2 + $0x160] sm:$0xff] }
 0x44d   :  { %1057 = vmatpush1.msra.mxu0 %v3039_v5  ;;  %1128 = vmatpush1.msra.mxu1 %v3040_v6  ;;  %v2611_v5 = vld [vmem:[#allocation2 + $0x170] sm:$0xff]  ;;  %v2614_v6 = vld [vmem:[#allocation2 + $0x148] sm:$0xff] }
 0x44e   :  { %1058 = vmatprep.subr.mxu0 %v3041_v7  ;;  %1129 = vmatprep.subr.mxu1 %v3042_v8  ;;  %v2617_v7 = vld [vmem:[#allocation2 + $0x158] sm:$0xff]  ;;  %v2620_v8 = vld [vmem:[#allocation2 + $0x140] sm:$0xff] }
 0x44f   :  { %1059 = vmatpush1.msra.mxu0 %v3043_v9  ;;  %1130 = vmatpush1.msra.mxu1 %v3044_v10  ;;  %v2623_v9 = vld [vmem:[#allocation2 + $0x150] sm:$0xff]  ;;  %v2626_v10 = vld [vmem:[#allocation2 + $0x128] sm:$0xff] }
 0x450   :  { %1060 = vmatprep.subr.mxu0 %v3045_v11  ;;  %1131 = vmatprep.subr.mxu1 %v3046_v12  ;;  %v2629_v11 = vld [vmem:[#allocation2 + $0x138] sm:$0xff]  ;;  %v2632_v12 = vld [vmem:[#allocation2 + $0x120] sm:$0xff] }
 0x451   :  { %1061 = vmatpush1.msra.mxu0 %v3047_v13  ;;  %1132 = vmatpush1.msra.mxu1 %v3048_v14  ;;  %v2635_v13 = vld [vmem:[#allocation2 + $0x130] sm:$0xff]  ;;  %v2638_v14 = vld [vmem:[#allocation2 + $0x108] sm:$0xff] }
 0x452   :  { %1062 = vmatprep.subr.mxu0 %v3056_v15  ;;  %1133 = vmatprep.subr.mxu1 %v3057_v16  ;;  %v2656_v15 = vld [vmem:[#allocation2 + $0xe0] sm:$0xff]  ;;  %v2659_v16 = vld [vmem:[#allocation2 + $0xf0] sm:$0xff] }
 0x453   :  { %1063 = vmatpush1.msra.mxu0 %v3058_v17  ;;  %1096 = vmatprep.mubr.f32.mxu0 %v3059_v18  ;;  %v2662_v17 = vld [vmem:[#allocation2 + $0xc8] sm:$0xff] }
 0x454   :  { %1134 = vmatpush1.msra.mxu1 %v3060_v19  ;;  %1167 = vmatprep.mubr.f32.mxu1 %v3059_v18  ;;  %v2665_v19 = vld [vmem:[#allocation2 + $0xd8] sm:$0xff] }
 0x455   :  { %1219 = vmatprep.subr.mxu0 %v2569_v20  ;;  %1290 = vmatprep.subr.mxu1 %v2572_v21 }
 0x4f4   :  { %v911_v22 = vpop.f32.mrf.mxu0  ;;  %v982_v23 = vpop.f32.mrf.mxu1 }
 0x4f6   :  { %v913_v24 = vpop.f32.mrf.mxu0  ;;  %v984_v25 = vpop.f32.mrf.mxu1 }
 0x4f7   :  { %v991_v26 = vcombine.low %v911_v22, %v913_v24  ;;  %v992_v27 = vcombine.low %v982_v23, %v984_v25  ;;  %v2668_v22 = vld [vmem:[#allocation2 + $0xc0] sm:$0xff]  ;;  %v2671_v23 = vld [vmem:[#allocation2 + $0xd0] sm:$0xff]  ;;  %v2674_v24 = vld [vmem:[#allocation2 + $0xa8] sm:$0xff] }
 0x4f8   :  { %v2677_v25 = vld [vmem:[#allocation2 + $0xb8] sm:$0xff] }
 0x4f9   :  { %v999_v28 = vrot.slane %v991_v26, %v3017_v56  ;;  %v1006_v29 = vrot.slane %v992_v27, %v3017_v56  ;;  %v2680_v26 = vld [vmem:[#allocation2 + $0xa0] sm:$0xff]  ;;  %v2683_v27 = vld [vmem:[#allocation2 + $0xb0] sm:$0xff] }
 0x4fb   :  { %v1007_v31 = vcombine.low %v999_v28, %v1006_v29  ;;  %v2686_v28 = vld [vmem:[#allocation2 + $0x88] sm:$0xff]  ;;  %v2689_v29 = vld [vmem:[#allocation2 + $0x98] sm:$0xff] }
 0x4fd   :  { %v1009_v32 = vadd.f32 %v1707_v30, %v1007_v31  ;;  %v2692_v30 = vld [vmem:[#allocation2 + $0x80] sm:$0xff]  ;;  %v2695_v31 = vld [vmem:[#allocation2 + $0x90] sm:$0xff] }
 0x4ff   :  { %v1708_v33 = vmul.f32 -1.442695, %v1009_v32  ;;  %v1017_v36 = vrot.slane %v1009_v32, 6  ;;  %v2698_v32 = vld [vmem:[#allocation2 + $0x68] sm:$0xff] }
 0x500   :  { %3061 = vst [vmem:[#allocation10_spill] sm:$0xff] %v2698_v32 }
 0x501   :  { %1807 = vpow2.f32 %v1708_v33  ;;  %v2701_v33 = vld [vmem:[#allocation2 + $0x78] sm:$0xff] }
 0x502   :  { %3062 = vst [vmem:[#allocation27_spill] sm:$0xff] %v2701_v33 }
 0x50e   :  { %v1808_v34 = vpop.eup %1807 }
 0x50f   :  { %v1013_v35 = vadd.f32 1.0, %v1808_v34  ;;  %v2704_v34 = vld [vmem:[#allocation2 + $0x60] sm:$0xff] }
 0x510   :  { %3063 = vst [vmem:[#allocation11_spill] sm:$0xff] %v2704_v34 }
 0x511   :  { %1809 = vrcp.f32 %v1013_v35  ;;  %v2707_v35 = vld [vmem:[#allocation2 + $0x70] sm:$0xff] }
 0x512   :  { %1811 = vtanh.f32 %v1017_v36  ;;  %3064 = vst [vmem:[#allocation12_spill] sm:$0xff] %v2707_v35  ;;  %v2710_v36 = vld [vmem:[#allocation2 + $0x48] sm:$0xff] }
 0x513   :  { %3065 = vst [vmem:[#allocation13_spill] sm:$0xff] %v2710_v36 }
 0x51e   :  { %v1810_v37 = vpop.eup %1809 }
 0x51f   :  { %v1021_v38 = vrot.slane %v1810_v37, 2  ;;  %v1812_v39 = vpop.eup %1811  ;;  %v1027_v43 = vrot.slane %v1810_v37, 4 }
 0x520   :  { %v1024_v40 = vmul.f32 %v1812_v39, %v1810_v37  ;;  %v2713_v37 = vld [vmem:[#allocation2 + $0x58] sm:$0xff]  ;;  %v2719_v39 = vld [vmem:[#allocation2 + $0x50] sm:$0xff] }
 0x521   :  { %v1023_v41 = vmul.f32 %v1021_v38, %v2478_v45  ;;  %v2644_v45 = vld [vmem:[#allocation2 + $0x100] sm:$0xff]  ;;  %3066 = vst [vmem:[#allocation14_spill] sm:$0xff] %v2713_v37  ;;  %3068 = vst [vmem:[#allocation16_spill] sm:$0xff] %v2719_v39 }
 0x522   :  { %v2716_v38 = vld [vmem:[#allocation2 + $0x40] sm:$0xff] }
 0x523   :  { %v2581_v42 = vadd.f32 %v1024_v40, %v1023_v41  ;;  %3067 = vst [vmem:[#allocation15_spill] sm:$0xff] %v2716_v38  ;;  %v2722_v40 = vld [vmem:[#allocation2 + $0x28] sm:$0xff]  ;;  %v2725_v41 = vld [vmem:[#allocation2 + $0x38] sm:$0xff] }
 0x524   :  { %3069 = vst [vmem:[#allocation17_spill] sm:$0xff] %v2722_v40  ;;  %3070 = vst [vmem:[#allocation18_spill] sm:$0xff] %v2725_v41 }
 0x525   :  { %1813 = vtanh.f32 %v2581_v42 }
 0x532   :  { %v1814_v44 = vpop.eup %1813 }
 0x533   :  { %v1029_v46 = vmul.f32 %v1814_v44, %v1027_v43  ;;  %v2728_v43 = vld [vmem:[#allocation2 + $0x20] sm:$0xff]  ;;  %v2731_v44 = vld [vmem:[#allocation2 + $0x30] sm:$0xff] }
 0x534   :  { %3071 = vst [vmem:[#allocation19_spill] sm:$0xff] %v2728_v43  ;;  %3072 = vst [vmem:[#allocation20_spill] sm:$0xff] %v2731_v44 }
 0x535   :  { %1097 = vmatmul.mubr.f32.vlgmr.msra.gmra.mxu0 %v1029_v46  ;;  %1168 = vmatmul.mubr.f32.vlgmr.msra.gmra.mxu1 %v1029_v46  ;;  %v2734_v46 = vld [vmem:[#allocation2 + $0x8] sm:$0xff] }
 0x536   :  { %1220 = vmatpush1.msra.mxu0 %v2481_v50  ;;  %1291 = vmatpush1.msra.mxu1 %v2484_v49  ;;  %3073 = vst [vmem:[#allocation21_spill] sm:$0xff] %v2734_v46 }
 0x537   :  { %1221 = vmatprep.subr.mxu0 %v2487_v63  ;;  %1292 = vmatprep.subr.mxu1 %v2490_v60 }
 0x538   :  { %1222 = vmatpush1.msra.mxu0 %v2493_v61  ;;  %1293 = vmatpush1.msra.mxu1 %v2496_v54 }
 0x539   :  { %1223 = vmatprep.subr.mxu0 %v2499_v2  ;;  %1294 = vmatprep.subr.mxu1 %v2502_v52 }
 0x53a   :  { %1224 = vmatpush1.msra.mxu0 %v2505_v0  ;;  %1295 = vmatpush1.msra.mxu1 %v2508_v55 }
 0x53b   :  { %1225 = vmatprep.subr.mxu0 %v2511_v51  ;;  %1296 = vmatprep.subr.mxu1 %v2514_v53 }
 0x53c   :  { %1226 = vmatpush1.msra.mxu0 %v2596_v47  ;;  %1297 = vmatpush1.msra.mxu1 %v2599_v48 }
 0x53d   :  { %1227 = vmatprep.subr.mxu0 %v2602_v1  ;;  %1298 = vmatprep.subr.mxu1 %v2605_v3 }
 0x53e   :  { %1228 = vmatpush1.msra.mxu0 %v2608_v4  ;;  %1299 = vmatpush1.msra.mxu1 %v2611_v5 }
 0x53f   :  { %1229 = vmatprep.subr.mxu0 %v2614_v6  ;;  %1300 = vmatprep.subr.mxu1 %v2617_v7 }
 0x540   :  { %1230 = vmatpush1.msra.mxu0 %v2620_v8  ;;  %1301 = vmatpush1.msra.mxu1 %v2623_v9 }
 0x541   :  { %1231 = vmatprep.subr.mxu0 %v2626_v10  ;;  %1302 = vmatprep.subr.mxu1 %v2629_v11 }
 0x542   :  { %1232 = vmatpush1.msra.mxu0 %v2632_v12  ;;  %1303 = vmatpush1.msra.mxu1 %v2635_v13 }
 0x543   :  { %1233 = vmatprep.subr.mxu0 %v2638_v14  ;;  %1304 = vmatprep.subr.mxu1 %v2641_v58 }
 0x544   :  { %1234 = vmatpush1.msra.mxu0 %v2644_v45  ;;  %1305 = vmatpush1.msra.mxu1 %v2647_v59 }
 0x545   :  { %1235 = vmatprep.subr.mxu0 %v2650_v62  ;;  %1306 = vmatprep.subr.mxu1 %v2653_v57 }
 0x546   :  { %1236 = vmatpush1.msra.mxu0 %v2656_v15  ;;  %1307 = vmatpush1.msra.mxu1 %v2659_v16 }
 0x547   :  { %1237 = vmatprep.subr.mxu0 %v2662_v17  ;;  %1308 = vmatprep.subr.mxu1 %v2665_v19 }
 0x548   :  { %1238 = vmatpush1.msra.mxu0 %v2668_v22  ;;  %1309 = vmatpush1.msra.mxu1 %v2671_v23 }
 0x549   :  { %1239 = vmatprep.subr.mxu0 %v2674_v24  ;;  %1310 = vmatprep.subr.mxu1 %v2677_v25 }
 0x54a   :  { %1240 = vmatpush1.msra.mxu0 %v2680_v26  ;;  %1311 = vmatpush1.msra.mxu1 %v2683_v27 }
 0x54b   :  { %1241 = vmatprep.subr.mxu0 %v2686_v28  ;;  %1312 = vmatprep.subr.mxu1 %v2689_v29 }
 0x54c   :  { %1242 = vmatpush1.msra.mxu0 %v2692_v30  ;;  %1313 = vmatpush1.msra.mxu1 %v2695_v31 }
 0x54d   :  { %1243 = vmatprep.subr.mxu0 %v2698_v32  ;;  %1314 = vmatprep.subr.mxu1 %v2701_v33 }
 0x54e   :  { %1244 = vmatpush1.msra.mxu0 %v2704_v34  ;;  %1315 = vmatpush1.msra.mxu1 %v2707_v35 }
 0x54f   :  { %1245 = vmatprep.subr.mxu0 %v2710_v36  ;;  %1316 = vmatprep.subr.mxu1 %v2713_v37 }
 0x550   :  { %1246 = vmatpush1.msra.mxu0 %v2716_v38  ;;  %1317 = vmatpush1.msra.mxu1 %v2719_v39  ;;  %v2737_v39 = vld [vmem:[#allocation2 + $0x18] sm:$0xff] }
 0x551   :  { %1247 = vmatprep.subr.mxu0 %v2722_v40  ;;  %1318 = vmatprep.subr.mxu1 %v2725_v41  ;;  %3074 = vst [vmem:[#allocation22_spill] sm:$0xff] %v2737_v39  ;;  %v2740_v40 = vld [vmem:[#allocation2] sm:$0xff]  ;;  %v2744_v41 = vld [vmem:[#allocation2 + $0x10] sm:$0xff] }
 0x552   :  { %1248 = vmatpush1.msra.mxu0 %v2728_v43  ;;  %1319 = vmatpush1.msra.mxu1 %v2731_v44  ;;  %3075 = vst [vmem:[#allocation8_spill] sm:$0xff] %v2740_v40  ;;  %3076 = vst [vmem:[#allocation9_spill] sm:$0xff] %v2744_v41 }
 0x553   :  { %1249 = vmatprep.subr.mxu0 %v2734_v46  ;;  %1320 = vmatprep.subr.mxu1 %v2737_v39 }
 0x554   :  { %1250 = vmatpush1.msra.mxu0 %v2740_v40  ;;  %1283 = vmatprep.mubr.f32.mxu0 %v3059_v18 }
 0x555   :  { %1321 = vmatpush1.msra.mxu1 %v2744_v41  ;;  %1354 = vmatprep.mubr.f32.mxu1 %v3059_v18  ;;  %v1709_v41 = vld [vmem:[%s2909_s0 + $0x28] sm:$0xff] }
 0x556   :  { %1406 = vmatprep.subr.mxu0 %v2569_v20  ;;  %1477 = vmatprep.subr.mxu1 %v2572_v21 }
 0x5f5   :  { %v1098_v46 = vpop.f32.mrf.mxu0  ;;  %v1169_v44 = vpop.f32.mrf.mxu1 }
 0x5f7   :  { %v1100_v43 = vpop.f32.mrf.mxu0  ;;  %v1171_v39 = vpop.f32.mrf.mxu1 }
 0x5f8   :  { %v1178_v38 = vcombine.low %v1098_v46, %v1100_v43  ;;  %v1179_v37 = vcombine.low %v1169_v44, %v1171_v39 }
 0x5fa   :  { %v1186_v40 = vrot.slane %v1178_v38, %v3017_v56  ;;  %v1193_v36 = vrot.slane %v1179_v37, %v3017_v56 }
 0x5fc   :  { %v1194_v35 = vcombine.low %v1186_v40, %v1193_v36  ;;  %v1596_v40 = vld [vmem:[%s2911_s2 + $0x28] sm:$0xff] }
 0x5fe   :  { %v1196_v18 = vadd.f32 %v1709_v41, %v1194_v35  ;;  %v1595_v41 = vld [vmem:[%s2911_s2 + $0x20] sm:$0xff] }
 0x600   :  { %v1710_v34 = vmul.f32 -1.442695, %v1196_v18  ;;  %v1204_v33 = vrot.slane %v1196_v18, 6  ;;  %v3089_v18 = vld [vmem:[#allocation21_spill] sm:$0xff] }
 0x602   :  { %1815 = vpow2.f32 %v1710_v34  ;;  %v1597_v34 = vld [vmem:[%s2911_s2 + $0x30] sm:$0xff] }
 0x60f   :  { %v1816_v20 = vpop.eup %1815 }
 0x610   :  { %v1200_v21 = vadd.f32 1.0, %v1816_v20  ;;  %v1594_v20 = vld [vmem:[%s2911_s2 + $0x18] sm:$0xff] }
 0x612   :  { %1817 = vrcp.f32 %v1200_v21  ;;  %v1593_v21 = vld [vmem:[%s2911_s2 + $0x10] sm:$0xff] }
 0x613   :  { %1819 = vtanh.f32 %v1204_v33  ;;  %v1598_v33 = vld [vmem:[%s2911_s2 + $0x38] sm:$0xff] }
 0x61f   :  { %v1818_v32 = vpop.eup %1817 }
 0x620   :  { %v1208_v43 = vrot.slane %v1818_v32, 2  ;;  %v1820_v39 = vpop.eup %1819  ;;  %v1214_v46 = vrot.slane %v1818_v32, 4 }
 0x621   :  { %v1211_v44 = vmul.f32 %v1820_v39, %v1818_v32  ;;  %v1599_v32 = vld [vmem:[%s2911_s2 + $0x40] sm:$0xff] }
 0x622   :  { %v1210_v38 = vmul.f32 %v1208_v43, %v2581_v42  ;;  %v3090_v42 = vld [vmem:[#allocation22_spill] sm:$0xff]  ;;  %v1592_v43 = vld [vmem:[%s2911_s2 + $0x8] sm:$0xff]  ;;  %v1591_v39 = vld [vmem:[%s2911_s2] sm:$0xff] }
 0x624   :  { %v2756_v37 = vadd.f32 %v1211_v44, %v1210_v38 }
 0x626   :  { %1821 = vtanh.f32 %v2756_v37 }
 0x633   :  { %v1822_v36 = vpop.eup %1821 }
 0x634   :  { %v1216_v35 = vmul.f32 %v1822_v36, %v1214_v46 }
 0x636   :  { %1284 = vmatmul.mubr.f32.vlgmr.msra.gmra.mxu0 %v1216_v35  ;;  %1355 = vmatmul.mubr.f32.vlgmr.msra.gmra.mxu1 %v1216_v35 }
 0x637   :  { %1407 = vmatpush1.msra.mxu0 %v2481_v50  ;;  %1478 = vmatpush1.msra.mxu1 %v2484_v49  ;;  %v3077_v50 = vld [vmem:[#allocation10_spill] sm:$0xff]  ;;  %v3078_v49 = vld [vmem:[#allocation27_spill] sm:$0xff] }
 0x638   :  { %1408 = vmatprep.subr.mxu0 %v2487_v63  ;;  %1479 = vmatprep.subr.mxu1 %v2490_v60  ;;  %v3079_v63 = vld [vmem:[#allocation11_spill] sm:$0xff]  ;;  %v3080_v60 = vld [vmem:[#allocation12_spill] sm:$0xff] }
 0x639   :  { %1409 = vmatpush1.msra.mxu0 %v2493_v61  ;;  %1480 = vmatpush1.msra.mxu1 %v2496_v54  ;;  %v3081_v61 = vld [vmem:[#allocation13_spill] sm:$0xff]  ;;  %v3082_v54 = vld [vmem:[#allocation14_spill] sm:$0xff] }
 0x63a   :  { %1410 = vmatprep.subr.mxu0 %v2499_v2  ;;  %1481 = vmatprep.subr.mxu1 %v2502_v52  ;;  %v3083_v2 = vld [vmem:[#allocation15_spill] sm:$0xff]  ;;  %v3084_v52 = vld [vmem:[#allocation16_spill] sm:$0xff] }
 0x63b   :  { %1411 = vmatpush1.msra.mxu0 %v2505_v0  ;;  %1482 = vmatpush1.msra.mxu1 %v2508_v55  ;;  %v3085_v0 = vld [vmem:[#allocation17_spill] sm:$0xff]  ;;  %v3086_v55 = vld [vmem:[#allocation18_spill] sm:$0xff] }
 0x63c   :  { %1412 = vmatprep.subr.mxu0 %v2511_v51  ;;  %1483 = vmatprep.subr.mxu1 %v2514_v53  ;;  %v3087_v51 = vld [vmem:[#allocation19_spill] sm:$0xff]  ;;  %v3088_v53 = vld [vmem:[#allocation20_spill] sm:$0xff] }
 0x63d   :  { %1413 = vmatpush1.msra.mxu0 %v2596_v47  ;;  %1484 = vmatpush1.msra.mxu1 %v2599_v48  ;;  %v3091_v47 = vld [vmem:[#allocation8_spill] sm:$0xff]  ;;  %v3092_v48 = vmov 0.0  }
 0x63e   :  { %1414 = vmatprep.subr.mxu0 %v2602_v1  ;;  %1485 = vmatprep.subr.mxu1 %v2605_v3  ;;  %v3093_v1 = vld [vmem:[#allocation9_spill] sm:$0xff] }
 0x63f   :  { %1415 = vmatpush1.msra.mxu0 %v2608_v4  ;;  %1486 = vmatpush1.msra.mxu1 %v2611_v5 }
 0x640   :  { %1416 = vmatprep.subr.mxu0 %v2614_v6  ;;  %1487 = vmatprep.subr.mxu1 %v2617_v7 }
 0x641   :  { %1417 = vmatpush1.msra.mxu0 %v2620_v8  ;;  %1488 = vmatpush1.msra.mxu1 %v2623_v9 }
 0x642   :  { %1418 = vmatprep.subr.mxu0 %v2626_v10  ;;  %1489 = vmatprep.subr.mxu1 %v2629_v11  ;;  %v1711_v11 = vld [vmem:[%s2909_s0 + $0x30] sm:$0xff] }
 0x643   :  { %1419 = vmatpush1.msra.mxu0 %v2632_v12  ;;  %1490 = vmatpush1.msra.mxu1 %v2635_v13 }
 0x644   :  { %1420 = vmatprep.subr.mxu0 %v2638_v14  ;;  %1491 = vmatprep.subr.mxu1 %v2641_v58 }
 0x645   :  { %1421 = vmatpush1.msra.mxu0 %v2644_v45  ;;  %1492 = vmatpush1.msra.mxu1 %v2647_v59 }
 0x646   :  { %1422 = vmatprep.subr.mxu0 %v2650_v62  ;;  %1493 = vmatprep.subr.mxu1 %v2653_v57 }
 0x647   :  { %1423 = vmatpush1.msra.mxu0 %v2656_v15  ;;  %1494 = vmatpush1.msra.mxu1 %v2659_v16 }
 0x648   :  { %1424 = vmatprep.subr.mxu0 %v2662_v17  ;;  %1495 = vmatprep.subr.mxu1 %v2665_v19 }
 0x649   :  { %1425 = vmatpush1.msra.mxu0 %v2668_v22  ;;  %1496 = vmatpush1.msra.mxu1 %v2671_v23 }
 0x64a   :  { %1426 = vmatprep.subr.mxu0 %v2674_v24  ;;  %1497 = vmatprep.subr.mxu1 %v2677_v25  ;;  %v1606_v25 = vld [vmem:[%s2911_s2 + $0x78] sm:$0xff] }
 0x64b   :  { %1427 = vmatpush1.msra.mxu0 %v2680_v26  ;;  %1498 = vmatpush1.msra.mxu1 %v2683_v27  ;;  %v1605_v26 = vld [vmem:[%s2911_s2 + $0x70] sm:$0xff]  ;;  %v1604_v27 = vld [vmem:[%s2911_s2 + $0x68] sm:$0xff] }
 0x64c   :  { %1428 = vmatprep.subr.mxu0 %v2686_v28  ;;  %1499 = vmatprep.subr.mxu1 %v2689_v29  ;;  %v1603_v28 = vld [vmem:[%s2911_s2 + $0x60] sm:$0xff]  ;;  %v1602_v29 = vld [vmem:[%s2911_s2 + $0x58] sm:$0xff] }
 0x64d   :  { %1429 = vmatpush1.msra.mxu0 %v2692_v30  ;;  %1500 = vmatpush1.msra.mxu1 %v2695_v31  ;;  %v1601_v30 = vld [vmem:[%s2911_s2 + $0x50] sm:$0xff]  ;;  %v1600_v31 = vld [vmem:[%s2911_s2 + $0x48] sm:$0xff] }
 0x64e   :  { %1430 = vmatprep.subr.mxu0 %v3077_v50  ;;  %1501 = vmatprep.subr.mxu1 %v3078_v49 }
 0x64f   :  { %1431 = vmatpush1.msra.mxu0 %v3079_v63  ;;  %1502 = vmatpush1.msra.mxu1 %v3080_v60  ;;  %v1713_v63 = vld [vmem:[%s2909_s0 + $0x38] sm:$0xff] }
 0x650   :  { %1432 = vmatprep.subr.mxu0 %v3081_v61  ;;  %1503 = vmatprep.subr.mxu1 %v3082_v54 }
 0x651   :  { %1433 = vmatpush1.msra.mxu0 %v3083_v2  ;;  %1504 = vmatpush1.msra.mxu1 %v3084_v52 }
 0x652   :  { %1434 = vmatprep.subr.mxu0 %v3085_v0  ;;  %1505 = vmatprep.subr.mxu1 %v3086_v55 }
 0x653   :  { %1435 = vmatpush1.msra.mxu0 %v3087_v51  ;;  %1506 = vmatpush1.msra.mxu1 %v3088_v53 }
 0x654   :  { %1436 = vmatprep.subr.mxu0 %v3089_v18  ;;  %1507 = vmatprep.subr.mxu1 %v3090_v42 }
 0x655   :  { %1437 = vmatpush1.msra.mxu0 %v3091_v47  ;;  %1470 = vmatprep.mubr.f32.mxu0 %v3092_v48 }
 0x656   :  { %1508 = vmatpush1.msra.mxu1 %v3093_v1  ;;  %1541 = vmatprep.mubr.f32.mxu1 %v3092_v48 }
 0x657   :  { %1733 = vmatprep.subr.mxu0 %v3092_v48 }
 0x6f6   :  { %v1285_v3 = vpop.f32.mrf.mxu0  ;;  %v1356_v4 = vpop.f32.mrf.mxu1 }
 0x6f8   :  { %v1287_v5 = vpop.f32.mrf.mxu0  ;;  %v1358_v6 = vpop.f32.mrf.mxu1 }
 0x6f9   :  { %v1365_v7 = vcombine.low %v1285_v3, %v1287_v5  ;;  %v1366_v8 = vcombine.low %v1356_v4, %v1358_v6  ;;  %v1715_v3 = vld [vmem:[%s2912_s3] ss:$0 sm:$0xff] }
 0x6fb   :  { %v1373_v9 = vrot.slane %v1365_v7, %v3017_v56  ;;  %v1380_v10 = vrot.slane %v1366_v8, %v3017_v56 }
 0x6fd   :  { %v1381_v12 = vcombine.low %v1373_v9, %v1380_v10 }
 0x6ff   :  { %v1383_v13 = vadd.f32 %v1711_v11, %v1381_v12 }
 0x701   :  { %v1712_v14 = vmul.f32 -1.442695, %v1383_v13  ;;  %v1391_v59 = vrot.slane %v1383_v13, 6 }
 0x703   :  { %1823 = vpow2.f32 %v1712_v14 }
 0x710   :  { %v1824_v58 = vpop.eup %1823 }
 0x711   :  { %v1387_v45 = vadd.f32 1.0, %v1824_v58 }
 0x713   :  { %1825 = vrcp.f32 %v1387_v45 }
 0x714   :  { %1827 = vtanh.f32 %v1391_v59 }
 0x720   :  { %v1826_v62 = vpop.eup %1825 }
 0x721   :  { %v1395_v57 = vrot.slane %v1826_v62, 2  ;;  %v1828_v15 = vpop.eup %1827  ;;  %v1401_v22 = vrot.slane %v1826_v62, 4 }
 0x722   :  { %v1398_v16 = vmul.f32 %v1828_v15, %v1826_v62 }
 0x723   :  { %v1397_v17 = vmul.f32 %v1395_v57, %v2756_v37 }
 0x725   :  { %v2830_v19 = vadd.f32 %v1398_v16, %v1397_v17 }
 0x727   :  { %1829 = vtanh.f32 %v2830_v19 }
 0x734   :  { %v1830_v23 = vpop.eup %1829 }
 0x735   :  { %v1403_v24 = vmul.f32 %v1830_v23, %v1401_v22 }
 0x737   :  { %1471 = vmatmul.mubr.f32.vlgmr.msra.gmra.mxu0 %v1403_v24  ;;  %1542 = vmatmul.mubr.f32.vlgmr.msra.gmra.mxu1 %v1403_v24 }
 0x738   :  { %1734 = vmatpush3.msra.mxu0 %v1606_v25  ;;  %1765 = vmatprep.mubr.msk.f32.mxu0 %vm1952_vm0, %v3092_v48 }
 0x739   :  { %1735 = vmatprep.subr.mxu0 %v3092_v48 }
 0x73a   :  { %1736 = vmatpush3.msra.mxu0 %v1605_v26 }
 0x73b   :  { %1737 = vmatprep.subr.mxu0 %v3092_v48 }
 0x73c   :  { %1738 = vmatpush3.msra.mxu0 %v1604_v27 }
 0x73d   :  { %1739 = vmatprep.subr.mxu0 %v3092_v48 }
 0x73e   :  { %1740 = vmatpush3.msra.mxu0 %v1603_v28 }
 0x73f   :  { %1741 = vmatprep.subr.mxu0 %v3092_v48 }
 0x740   :  { %1742 = vmatpush3.msra.mxu0 %v1602_v29 }
 0x741   :  { %1743 = vmatprep.subr.mxu0 %v3092_v48 }
 0x742   :  { %1744 = vmatpush3.msra.mxu0 %v1601_v30 }
 0x743   :  { %1745 = vmatprep.subr.mxu0 %v3092_v48 }
 0x744   :  { %1746 = vmatpush3.msra.mxu0 %v1600_v31 }
 0x745   :  { %1747 = vmatprep.subr.mxu0 %v3092_v48 }
 0x746   :  { %1748 = vmatpush3.msra.mxu0 %v1599_v32 }
 0x747   :  { %1749 = vmatprep.subr.mxu0 %v3092_v48 }
 0x748   :  { %1750 = vmatpush3.msra.mxu0 %v1598_v33 }
 0x749   :  { %1751 = vmatprep.subr.mxu0 %v3092_v48 }
 0x74a   :  { %1752 = vmatpush3.msra.mxu0 %v1597_v34 }
 0x74b   :  { %1753 = vmatprep.subr.mxu0 %v3092_v48 }
 0x74c   :  { %1754 = vmatpush3.msra.mxu0 %v1596_v40 }
 0x74d   :  { %1755 = vmatprep.subr.mxu0 %v3092_v48 }
 0x74e   :  { %1756 = vmatpush3.msra.mxu0 %v1595_v41 }
 0x74f   :  { %1757 = vmatprep.subr.mxu0 %v3092_v48 }
 0x750   :  { %1758 = vmatpush3.msra.mxu0 %v1594_v20 }
 0x751   :  { %1759 = vmatprep.subr.mxu0 %v3092_v48 }
 0x752   :  { %1760 = vmatpush3.msra.mxu0 %v1593_v21 }
 0x753   :  { %1761 = vmatprep.subr.mxu0 %v3092_v48 }
 0x754   :  { %1762 = vmatpush3.msra.mxu0 %v1592_v43 }
 0x755   :  { %1763 = vmatprep.subr.mxu0 %v3092_v48 }
 0x756   :  { %1764 = vmatpush3.msra.mxu0 %v1591_v39 }
 0x7f7   :  { %v1472_v44 = vpop.f32.mrf.mxu0  ;;  %v1543_v38 = vpop.f32.mrf.mxu1 }
 0x7f9   :  { %v1474_v37 = vpop.f32.mrf.mxu0  ;;  %v1545_v46 = vpop.f32.mrf.mxu1 }
 0x7fa   :  { %v1552_v36 = vcombine.low %v1472_v44, %v1474_v37  ;;  %v1553_v35 = vcombine.low %v1543_v38, %v1545_v46 }
 0x7fc   :  { %v1560_v50 = vrot.slane %v1552_v36, %v3017_v56  ;;  %v1567_v49 = vrot.slane %v1553_v35, %v3017_v56 }
 0x7fe   :  { %v1568_v60 = vcombine.low %v1560_v50, %v1567_v49 }
 0x800   :  { %v1570_v61 = vadd.f32 %v1713_v63, %v1568_v60 }
 0x802   :  { %v1714_v54 = vmul.f32 -1.442695, %v1570_v61  ;;  %v1578_v0 = vrot.slane %v1570_v61, 6 }
 0x804   :  { %1831 = vpow2.f32 %v1714_v54 }
 0x811   :  { %v1832_v2 = vpop.eup %1831 }
 0x812   :  { %v1574_v52 = vadd.f32 1.0, %v1832_v2 }
 0x814   :  { %1833 = vrcp.f32 %v1574_v52 }
 0x815   :  { %1835 = vtanh.f32 %v1578_v0 }
 0x821   :  { %v1834_v55 = vpop.eup %1833 }
 0x822   :  { %v1582_v51 = vrot.slane %v1834_v55, 2  ;;  %v1836_v53 = vpop.eup %1835  ;;  %v1588_v47 = vrot.slane %v1834_v55, 4 }
 0x823   :  { %v1585_v18 = vmul.f32 %v1836_v53, %v1834_v55 }
 0x824   :  { %v1584_v42 = vmul.f32 %v1582_v51, %v2830_v19 }
 0x826   :  { %v1586_v56 = vadd.f32 %v1585_v18, %v1584_v42 }
 0x828   :  { %1837 = vtanh.f32 %v1586_v56 }
 0x835   :  { %v1838_v48 = vpop.eup %1837 }
 0x836   :  { %v1590_v1 = vmul.f32 %v1838_v48, %v1588_v47 }
 0x838   :  { %1766 = vmatmul.mubr.f32.vlgmr.msra.gmra.mxu0 %v1590_v1 }
 0x8f8   :  { %v1680_v4 = vpop.f32.mrf.mxu0 }
 0x8f9   :  { %v1681_v5 = vadd.f32 %v1715_v3, %v1680_v4 }
 0x8fa   :  { %v1767_v6 = vpop.f32.mrf.mxu0 }
 0x8fb   :  { %1684 = vst [vmem:[#allocation5] sm:$0x3] %v1681_v5 }
 0x8fc   :  { %1934 = shalt.err (!%p1931_p9)
}
 0x8fd   :  { %1694 = dma.vmem_to_hbm [thread:$0]  %s1692_s17, 32, %s2913_s4, [#allocation4]  }
 0x8fe   :  { %1945 = dma.done.wait [#allocation4], 32  }
 0x8ff   :  { %1946 = vsyncadd [#allocation4], 4294967264 }
 0x900   :  { %1698 = vsyncpa [#allocation3], 1 }
 0x901   :  { %1699 = vsyncpa [#allocation4], 1 }

</bundles_post_ra>
